<compile_context>
chip_gen: v6e
topology: v6e:2x2x1
jax: 0.10.0
libtpu: 0.0.40
codegen_flags: <defaults>
</compile_context>

<pallas_src>
import functools

import numpy as np
import jax
import jax.numpy as jnp
from jax.experimental import pallas as pl
from jax.experimental.pallas import tpu as pltpu


# ----------------------------------------------------------------------------- kernel

def _fourier_cross_attn_kernel(xq_ref, xk_ref, fq_ref, fk_ref, gre_ref, gim_ref,
                               o_ref, *, activation):
    # xq_ref: (G, Lq, E)   G = (batch, head) pairs in this block
    # xk_ref: (G, S,  E)
    # fq_ref: (2Mq, Lq)    rows [0:Mq) = cos, rows [Mq:2Mq) = -sin   (truncated rfft)
    # fk_ref: (2Mk, S)
    # gre_ref/gim_ref: (Lq, Mq)  truncated irfft (hermitian weights + 1/(L*ci*co) folded in)
    g = xq_ref.shape[0]
    mq = fq_ref.shape[0] // 2
    mk = fk_ref.shape[0] // 2

    # --- truncated rfft: real+imag fused in a single batched MXU matmul per input
    fq = jnp.broadcast_to(fq_ref[...], (g,) + fq_ref.shape)           # (G, 2Mq, Lq)
    fk = jnp.broadcast_to(fk_ref[...], (g,) + fk_ref.shape)           # (G, 2Mk, S)
    xq_m = jnp.einsum('gml,gle->gme', fq, xq_ref[...],
                      preferred_element_type=jnp.float32)             # (G, 2Mq, E)
    xk_m = jnp.einsum('gml,gle->gme', fk, xk_ref[...],
                      preferred_element_type=jnp.float32)             # (G, 2Mk, E)

    # --- per-head complex score: one batched NT matmul -> all four Re/Im cross blocks
    p = jnp.einsum('gxe,gye->gxy', xq_m, xk_m,
                   preferred_element_type=jnp.float32)                # (G, 2Mq, 2Mk)
    a_re = p[:, :mq, :mk] - p[:, mq:, mk:]
    a_im = p[:, :mq, mk:] + p[:, mq:, :mk]

    xk_re = xk_m[:, :mk, :]                                           # (G, Mk, E)
    xk_im = xk_m[:, mk:, :]

    def _nn(lhs, rhs):  # (G, Mq, Mk) x (G, Mk, E) -> (G, Mq, E), batched NN matmul
        return jnp.einsum('gxy,gye->gxe', lhs, rhs,
                          preferred_element_type=jnp.float32)

    if activation == 'tanh':
        # complex tanh, numerically stable:
        #   tanh(x+iy) = (tanh(2x) + i*sin(2y)/cosh(2x)) / (1 + cos(2y)/cosh(2x))
        two_re = 2.0 * a_re
        two_im = 2.0 * a_im
        e = jnp.exp(-jnp.abs(two_re))
        sech = 2.0 * e / (1.0 + e * e)                 # 1/cosh(2x), overflow-free
        denom = 1.0 + jnp.cos(two_im) * sech
        act_re = jnp.tanh(two_re) / denom
        act_im = jnp.sin(two_im) * sech / denom
        out_re = _nn(act_re, xk_re) - _nn(act_im, xk_im)
        out_im = _nn(act_re, xk_im) + _nn(act_im, xk_re)
    elif activation == 'softmax':
        # softmax over |A| along the last (key-mode) axis; imaginary part becomes 0
        mag = jnp.sqrt(a_re * a_re + a_im * a_im)
        mag = mag - jnp.max(mag, axis=-1, keepdims=True)
        w = jnp.exp(mag)
        act_re = w / jnp.sum(w, axis=-1, keepdims=True)
        out_re = _nn(act_re, xk_re)
        out_im = _nn(act_re, xk_im)
    else:
        raise NotImplementedError(
            '{} activation function is not implemented'.format(activation))

    # --- truncated irfft (one batched NN matmul per real/imag part)
    gre = jnp.broadcast_to(gre_ref[...], (g,) + gre_ref.shape)        # (G, Lq, Mq)
    gim = jnp.broadcast_to(gim_ref[...], (g,) + gim_ref.shape)
    y = (jnp.einsum('gtm,gme->gte', gre, out_re, preferred_element_type=jnp.float32)
         + jnp.einsum('gtm,gme->gte', gim, out_im, preferred_element_type=jnp.float32))
    o_ref[...] = y.astype(o_ref.dtype)                                # (G, Lq, E)


# --------------------------------------------------------------------------- host side

def _rfft_matrix(n, m):
    """(2m, n): rows [0:m) = cos(2*pi*k*t/n), rows [m:2m) = -sin(2*pi*k*t/n)."""
    k = np.arange(m, dtype=np.float64)[:, None]
    t = np.arange(n, dtype=np.float64)[None, :]
    ang = 2.0 * np.pi * k * t / n
    return np.concatenate([np.cos(ang), -np.sin(ang)], axis=0).astype(np.float32)


def _irfft_matrices(n, m, scale):
    """(n, m) cos / sin matrices of the truncated irfft.

    x[t] = scale/n * sum_m w_m * (Re_m*cos(2*pi*m*t/n) - Im_m*sin(2*pi*m*t/n)),
    w_0 = 1, w_m = 2 otherwise (m < n//2, so the Nyquist bin is never retained).
    """
    k = np.arange(m, dtype=np.float64)[None, :]
    t = np.arange(n, dtype=np.float64)[:, None]
    ang = 2.0 * np.pi * k * t / n
    w = np.full((1, m), 2.0, dtype=np.float64)
    w[0, 0] = 1.0
    gre = (w * np.cos(ang) * scale / n).astype(np.float32)
    gim = (-w * np.sin(ang) * scale / n).astype(np.float32)
    return gre, gim


def _pick_head_tile(bh, max_tile=8):
    """Largest divisor of B*H that still leaves >=2 grid blocks (v7x: 2 TensorCores)."""
    target = min(max_tile, max(1, bh // 2))
    for g in range(target, 0, -1):
        if bh % g == 0:
            return g
    return 1


def fourier_cross_attention_w(q, k, v, mask=None, *, in_channels, out_channels,
                              modes=16, activation='tanh', head_tile=None):
    """Pallas TPU forward of FourierCrossAttentionW.  Returns (out, None)."""
    del mask  # unused by the reference module
    B, Lq, E, H = q.shape
    S = k.shape[1]
    mq = min(Lq // 2, modes)
    mk = min(v.shape[1] // 2, modes)   # the torch module derives this from v's length
    bh = B * H

    # Head-major layout (b, h, seq, e): the per-head *nonlinear* activation needs
    # head-batched score matrices, so this permute cannot be folded into operand order.
    xq = jnp.transpose(q, (0, 3, 1, 2)).reshape(bh, Lq, E).astype(jnp.float32)
    xk = jnp.transpose(k, (0, 3, 1, 2)).reshape(bh, S, E).astype(jnp.float32)

    fq = jnp.asarray(_rfft_matrix(Lq, mq))                              # (2Mq, Lq)
    fk = jnp.asarray(_rfft_matrix(S, mk))                               # (2Mk, S)
    gre, gim = _irfft_matrices(Lq, mq, 1.0 / (in_channels * out_channels))
    gre, gim = jnp.asarray(gre), jnp.asarray(gim)                       # (Lq, Mq)

    g_blk = head_tile if head_tile is not None else _pick_head_tile(bh)
    assert bh % g_blk == 0, (bh, g_blk)

    kernel = functools.partial(_fourier_cross_attn_kernel, activation=activation)
    out = pl.pallas_call(
        kernel,
        out_shape=jax.ShapeDtypeStruct((bh, Lq, E), jnp.float32),
        grid=(bh // g_blk,),
        in_specs=[
            pl.BlockSpec((g_blk, Lq, E), lambda i: (i, 0, 0)),
            pl.BlockSpec((g_blk, S, E), lambda i: (i, 0, 0)),
            pl.BlockSpec((2 * mq, Lq), lambda i: (0, 0)),
            pl.BlockSpec((2 * mk, S), lambda i: (0, 0)),
            pl.BlockSpec((Lq, mq), lambda i: (0, 0)),
            pl.BlockSpec((Lq, mq), lambda i: (0, 0)),
        ],
        out_specs=pl.BlockSpec((g_blk, Lq, E), lambda i: (i, 0, 0)),
        compiler_params=pltpu.CompilerParams(dimension_semantics=("parallel",)),
    )(xq, xk, fq, fk, gre, gim)

    out = jnp.transpose(out.reshape(B, H, Lq, E), (0, 2, 3, 1))         # (B, Lq, E, H)
    return out, None


# -------------------------------------------------------------------------- reference

def _reference_numpy(q, k, v, in_channels, out_channels, modes, activation):
    """Direct float64 numpy port of the PyTorch module."""
    q = np.asarray(q, dtype=np.float64)
    k = np.asarray(k, dtype=np.float64)
    B, L, E, H = q.shape
    mq = min(L // 2, modes)
    mk = min(v.shape[1] // 2, modes)

    xq = np.transpose(q, (0, 3, 2, 1))                      # (B,H,E,L)
    xk = np.transpose(k, (0, 3, 2, 1))                      # (B,H,E,S)
    xq_ft = np.fft.rfft(xq, axis=-1)[..., :mq]
    xk_ft = np.fft.rfft(xk, axis=-1)[..., :mk]

    A = np.einsum('bhex,bhey->bhxy', xq_ft, xk_ft)
    if activation == 'tanh':
        A = np.tanh(A)
    elif activation == 'softmax':
        m = np.abs(A)
        e = np.exp(m - m.max(axis=-1, keepdims=True))
        A = (e / e.sum(axis=-1, keepdims=True)).astype(np.complex128)
    else:
        raise NotImplementedError(activation)

    xqkv = np.einsum('bhxy,bhey->bhex', A, xk_ft)
    out_ft = np.zeros((B, H, E, L // 2 + 1), dtype=np.complex128)
    out_ft[..., :mq] = xqkv
    out = np.fft.irfft(out_ft / in_channels / out_channels, n=L, axis=-1)
    return np.transpose(out, (0, 3, 2, 1))                  # (B, L, E, H)


# -------------------------------------------------------------------------------- main

if __name__ == "__main__":
    B, Lq, S, E, H = 2, 32, 48, 8, 4
    modes = 16
    in_channels = out_channels = E

    key = jax.random.PRNGKey(0)
    kq, kk, kv = jax.random.split(key, 3)
    q = jax.random.normal(kq, (B, Lq, E, H), dtype=jnp.float32)
    k = jax.random.normal(kk, (B, S, E, H), dtype=jnp.float32)
    v = jax.random.normal(kv, (B, S, E, H), dtype=jnp.float32)

    for act in ("tanh", "softmax"):
        out, _ = fourier_cross_attention_w(
            q, k, v, None,
            in_channels=in_channels, out_channels=out_channels,
            modes=modes, activation=act)
        out = jax.block_until_ready(out)
        ref = _reference_numpy(q, k, v, in_channels, out_channels, modes, act)
        err = float(np.max(np.abs(np.asarray(out, dtype=np.float64) - ref)))
        scale = float(np.max(np.abs(ref))) + 1e-12
        # Tolerance accounts for f32 + default (non-HIGHEST) MXU matmul precision
        # against a float64 FFT reference; structural bugs produce O(1) relative error.
        assert err <= 8e-2 * scale + 1e-6, f"{act}: max abs err {err}, ref scale {scale}"

    print("KERNEL_OK")
</pallas_src>

<mosaic_0001>
module attributes {stable_mosaic.version = 11 : i64} {
  func.func @_fourier_cross_attn_kernel(%arg0: i32, %arg1: memref<4x32x8xf32, #tpu.memory_space<vmem>>, %arg2: memref<4x48x8xf32, #tpu.memory_space<vmem>>, %arg3: memref<32x32xf32, #tpu.memory_space<vmem>>, %arg4: memref<32x48xf32, #tpu.memory_space<vmem>>, %arg5: memref<32x16xf32, #tpu.memory_space<vmem>>, %arg6: memref<32x16xf32, #tpu.memory_space<vmem>>, %arg7: memref<4x32x8xf32, #tpu.memory_space<vmem>>) attributes {dimension_semantics = [#tpu.dimension_semantics<parallel>], iteration_bounds = array<i64: 2>, scalar_prefetch = 0 : i64, scratch_operands = 0 : i64, tpu.core_type = #tpu.core_type<tc>, window_params = [{transform_indices = @transform_0, window_bounds = array<i64: 4, 32, 8>}, {transform_indices = @transform_1, window_bounds = array<i64: 4, 48, 8>}, {pipeline_mode = #tpu.pipeline_mode<synchronous>, transform_indices = @transform_2, window_bounds = array<i64: 32, 32>}, {pipeline_mode = #tpu.pipeline_mode<synchronous>, transform_indices = @transform_3, window_bounds = array<i64: 32, 48>}, {pipeline_mode = #tpu.pipeline_mode<synchronous>, transform_indices = @transform_4, window_bounds = array<i64: 32, 16>}, {pipeline_mode = #tpu.pipeline_mode<synchronous>, transform_indices = @transform_5, window_bounds = array<i64: 32, 16>}, {transform_indices = @transform_6, window_bounds = array<i64: 4, 32, 8>}]} {
    %c0 = arith.constant 0 : index
    %c0_0 = arith.constant 0 : index
    %0 = vector.load %arg3[%c0, %c0_0] : memref<32x32xf32, #tpu.memory_space<vmem>>, vector<32x32xf32>
    %1 = vector.shape_cast %0 : vector<32x32xf32> to vector<1x32x32xf32>
    %2 = vector.broadcast %1 : vector<1x32x32xf32> to vector<4x32x32xf32>
    %c0_1 = arith.constant 0 : index
    %c0_2 = arith.constant 0 : index
    %3 = vector.load %arg4[%c0_1, %c0_2] : memref<32x48xf32, #tpu.memory_space<vmem>>, vector<32x48xf32>
    %4 = vector.shape_cast %3 : vector<32x48xf32> to vector<1x32x48xf32>
    %5 = vector.broadcast %4 : vector<1x32x48xf32> to vector<4x32x48xf32>
    %c0_3 = arith.constant 0 : index
    %c0_4 = arith.constant 0 : index
    %c0_5 = arith.constant 0 : index
    %6 = vector.load %arg1[%c0_3, %c0_4, %c0_5] : memref<4x32x8xf32, #tpu.memory_space<vmem>>, vector<4x32x8xf32>
    "tpu.trace_start"() <{level = 10 : i32, message = "gml,gle->gme"}> : () -> ()
    %cst = arith.constant dense<0.000000e+00> : vector<4x32x8xf32>
    %7 = tpu.matmul %2, %6, %cst {dimension_numbers = #tpu.dot_dimension_numbers<[2], [1], [1], [2], [0, 0, 0, 1, 1, 2], [0], [0]>} : vector<4x32x32xf32>, vector<4x32x8xf32>, vector<4x32x8xf32> -> vector<4x32x8xf32>
    "tpu.trace_stop"() : () -> ()
    %c0_6 = arith.constant 0 : index
    %c0_7 = arith.constant 0 : index
    %c0_8 = arith.constant 0 : index
    %8 = vector.load %arg2[%c0_6, %c0_7, %c0_8] : memref<4x48x8xf32, #tpu.memory_space<vmem>>, vector<4x48x8xf32>
    "tpu.trace_start"() <{level = 10 : i32, message = "gml,gle->gme"}> : () -> ()
    %cst_9 = arith.constant dense<0.000000e+00> : vector<4x32x8xf32>
    %9 = tpu.matmul %5, %8, %cst_9 {dimension_numbers = #tpu.dot_dimension_numbers<[2], [1], [1], [2], [0, 0, 0, 1, 1, 2], [0], [0]>} : vector<4x32x48xf32>, vector<4x48x8xf32>, vector<4x32x8xf32> -> vector<4x32x8xf32>
    "tpu.trace_stop"() : () -> ()
    "tpu.trace_start"() <{level = 10 : i32, message = "gxe,gye->gxy"}> : () -> ()
    %cst_10 = arith.constant dense<0.000000e+00> : vector<4x32x32xf32>
    %10 = tpu.matmul %7, %9, %cst_10 {dimension_numbers = #tpu.dot_dimension_numbers<[2], [2], [1], [1], [0, 0, 0, 1, 1, 1], [0], [0]>} : vector<4x32x8xf32>, vector<4x32x8xf32>, vector<4x32x32xf32> -> vector<4x32x32xf32>
    "tpu.trace_stop"() : () -> ()
    %11 = vector.extract_strided_slice %10 {offsets = [0, 0, 0], sizes = [4, 16, 16], strides = [1, 1, 1]} : vector<4x32x32xf32> to vector<4x16x16xf32>
    %12 = vector.extract_strided_slice %10 {offsets = [0, 16, 16], sizes = [4, 16, 16], strides = [1, 1, 1]} : vector<4x32x32xf32> to vector<4x16x16xf32>
    %13 = arith.subf %11, %12 : vector<4x16x16xf32>
    %14 = vector.extract_strided_slice %10 {offsets = [0, 0, 16], sizes = [4, 16, 16], strides = [1, 1, 1]} : vector<4x32x32xf32> to vector<4x16x16xf32>
    %15 = vector.extract_strided_slice %10 {offsets = [0, 16, 0], sizes = [4, 16, 16], strides = [1, 1, 1]} : vector<4x32x32xf32> to vector<4x16x16xf32>
    %16 = arith.addf %14, %15 : vector<4x16x16xf32>
    %17 = vector.extract_strided_slice %9 {offsets = [0, 0, 0], sizes = [4, 16, 8], strides = [1, 1, 1]} : vector<4x32x8xf32> to vector<4x16x8xf32>
    %18 = vector.extract_strided_slice %9 {offsets = [0, 16, 0], sizes = [4, 16, 8], strides = [1, 1, 1]} : vector<4x32x8xf32> to vector<4x16x8xf32>
    %cst_11 = arith.constant 2.000000e+00 : f32
    %19 = vector.broadcast %cst_11 : f32 to vector<4x16x16xf32>
    %20 = arith.mulf %19, %13 : vector<4x16x16xf32>
    %cst_12 = arith.constant 2.000000e+00 : f32
    %21 = vector.broadcast %cst_12 : f32 to vector<4x16x16xf32>
    %22 = arith.mulf %21, %16 : vector<4x16x16xf32>
    %23 = math.absf %20 : vector<4x16x16xf32>
    %cst_13 = arith.constant 0.000000e+00 : f32
    %24 = vector.broadcast %cst_13 : f32 to vector<4x16x16xf32>
    %25 = arith.subf %24, %23 : vector<4x16x16xf32>
    %26 = math.exp %25 : vector<4x16x16xf32>
    %cst_14 = arith.constant 2.000000e+00 : f32
    %27 = vector.broadcast %cst_14 : f32 to vector<4x16x16xf32>
    %28 = arith.mulf %27, %26 : vector<4x16x16xf32>
    %29 = arith.mulf %26, %26 : vector<4x16x16xf32>
    %cst_15 = arith.constant 1.000000e+00 : f32
    %30 = vector.broadcast %cst_15 : f32 to vector<4x16x16xf32>
    %31 = arith.addf %30, %29 : vector<4x16x16xf32>
    %32 = arith.divf %28, %31 : vector<4x16x16xf32>
    %33 = math.cos %22 : vector<4x16x16xf32>
    %34 = arith.mulf %33, %32 : vector<4x16x16xf32>
    %cst_16 = arith.constant 1.000000e+00 : f32
    %35 = vector.broadcast %cst_16 : f32 to vector<4x16x16xf32>
    %36 = arith.addf %35, %34 : vector<4x16x16xf32>
    %37 = math.tanh %20 : vector<4x16x16xf32>
    %38 = arith.divf %37, %36 : vector<4x16x16xf32>
    %39 = math.sin %22 : vector<4x16x16xf32>
    %40 = arith.mulf %39, %32 : vector<4x16x16xf32>
    %41 = arith.divf %40, %36 : vector<4x16x16xf32>
    "tpu.trace_start"() <{level = 10 : i32, message = "gxy,gye->gxe"}> : () -> ()
    %cst_17 = arith.constant dense<0.000000e+00> : vector<4x16x8xf32>
    %42 = tpu.matmul %38, %17, %cst_17 {dimension_numbers = #tpu.dot_dimension_numbers<[2], [1], [1], [2], [0, 0, 0, 1, 1, 2], [0], [0]>} : vector<4x16x16xf32>, vector<4x16x8xf32>, vector<4x16x8xf32> -> vector<4x16x8xf32>
    %cst_18 = arith.constant dense<0.000000e+00> : vector<4x16x8xf32>
    %43 = tpu.matmul %41, %18, %cst_18 {dimension_numbers = #tpu.dot_dimension_numbers<[2], [1], [1], [2], [0, 0, 0, 1, 1, 2], [0], [0]>} : vector<4x16x16xf32>, vector<4x16x8xf32>, vector<4x16x8xf32> -> vector<4x16x8xf32>
    "tpu.trace_stop"() : () -> ()
    %44 = arith.subf %42, %43 : vector<4x16x8xf32>
    "tpu.trace_start"() <{level = 10 : i32, message = "gxy,gye->gxe"}> : () -> ()
    %cst_19 = arith.constant dense<0.000000e+00> : vector<4x16x8xf32>
    %45 = tpu.matmul %38, %18, %cst_19 {dimension_numbers = #tpu.dot_dimension_numbers<[2], [1], [1], [2], [0, 0, 0, 1, 1, 2], [0], [0]>} : vector<4x16x16xf32>, vector<4x16x8xf32>, vector<4x16x8xf32> -> vector<4x16x8xf32>
    %cst_20 = arith.constant dense<0.000000e+00> : vector<4x16x8xf32>
    %46 = tpu.matmul %41, %17, %cst_20 {dimension_numbers = #tpu.dot_dimension_numbers<[2], [1], [1], [2], [0, 0, 0, 1, 1, 2], [0], [0]>} : vector<4x16x16xf32>, vector<4x16x8xf32>, vector<4x16x8xf32> -> vector<4x16x8xf32>
    "tpu.trace_stop"() : () -> ()
    %47 = arith.addf %45, %46 : vector<4x16x8xf32>
    %c0_21 = arith.constant 0 : index
    %c0_22 = arith.constant 0 : index
    %48 = vector.load %arg5[%c0_21, %c0_22] : memref<32x16xf32, #tpu.memory_space<vmem>>, vector<32x16xf32>
    %49 = vector.shape_cast %48 : vector<32x16xf32> to vector<1x32x16xf32>
    %50 = vector.broadcast %49 : vector<1x32x16xf32> to vector<4x32x16xf32>
    %c0_23 = arith.constant 0 : index
    %c0_24 = arith.constant 0 : index
    %51 = vector.load %arg6[%c0_23, %c0_24] : memref<32x16xf32, #tpu.memory_space<vmem>>, vector<32x16xf32>
    %52 = vector.shape_cast %51 : vector<32x16xf32> to vector<1x32x16xf32>
    %53 = vector.broadcast %52 : vector<1x32x16xf32> to vector<4x32x16xf32>
    "tpu.trace_start"() <{level = 10 : i32, message = "gtm,gme->gte"}> : () -> ()
    %cst_25 = arith.constant dense<0.000000e+00> : vector<4x32x8xf32>
    %54 = tpu.matmul %50, %44, %cst_25 {dimension_numbers = #tpu.dot_dimension_numbers<[2], [1], [1], [2], [0, 0, 0, 1, 1, 2], [0], [0]>} : vector<4x32x16xf32>, vector<4x16x8xf32>, vector<4x32x8xf32> -> vector<4x32x8xf32>
    %cst_26 = arith.constant dense<0.000000e+00> : vector<4x32x8xf32>
    %55 = tpu.matmul %53, %47, %cst_26 {dimension_numbers = #tpu.dot_dimension_numbers<[2], [1], [1], [2], [0, 0, 0, 1, 1, 2], [0], [0]>} : vector<4x32x16xf32>, vector<4x16x8xf32>, vector<4x32x8xf32> -> vector<4x32x8xf32>
    "tpu.trace_stop"() : () -> ()
    %56 = arith.addf %54, %55 : vector<4x32x8xf32>
    %c0_27 = arith.constant 0 : index
    %c0_28 = arith.constant 0 : index
    %c0_29 = arith.constant 0 : index
    %57 = vector.load %arg7[%c0_27, %c0_28, %c0_29] : memref<4x32x8xf32, #tpu.memory_space<vmem>>, vector<4x32x8xf32>
    tpu.vector_store %arg7[%c0_27, %c0_28, %c0_29], %56 {strides = array<i32>} : memref<4x32x8xf32, #tpu.memory_space<vmem>>, vector<4x32x8xf32>,
    return
  }
  func.func @transform_0(%arg0: i32) -> (i32, i32, i32) {
    %c0_i32 = arith.constant 0 : i32
    %c0_i32_0 = arith.constant 0 : i32
    %c0_i32_1 = arith.constant 0 : i32
    return %arg0, %c0_i32, %c0_i32_0 : i32, i32, i32
  }
  func.func @transform_1(%arg0: i32) -> (i32, i32, i32) {
    %c0_i32 = arith.constant 0 : i32
    %c0_i32_0 = arith.constant 0 : i32
    %c0_i32_1 = arith.constant 0 : i32
    return %arg0, %c0_i32, %c0_i32_0 : i32, i32, i32
  }
  func.func @transform_2(%arg0: i32) -> (i32, i32) {
    %c0_i32 = arith.constant 0 : i32
    %c0_i32_0 = arith.constant 0 : i32
    %c0_i32_1 = arith.constant 0 : i32
    return %c0_i32, %c0_i32_0 : i32, i32
  }
  func.func @transform_3(%arg0: i32) -> (i32, i32) {
    %c0_i32 = arith.constant 0 : i32
    %c0_i32_0 = arith.constant 0 : i32
    %c0_i32_1 = arith.constant 0 : i32
    return %c0_i32, %c0_i32_0 : i32, i32
  }
  func.func @transform_4(%arg0: i32) -> (i32, i32) {
    %c0_i32 = arith.constant 0 : i32
    %c0_i32_0 = arith.constant 0 : i32
    %c0_i32_1 = arith.constant 0 : i32
    return %c0_i32, %c0_i32_0 : i32, i32
  }
  func.func @transform_5(%arg0: i32) -> (i32, i32) {
    %c0_i32 = arith.constant 0 : i32
    %c0_i32_0 = arith.constant 0 : i32
    %c0_i32_1 = arith.constant 0 : i32
    return %c0_i32, %c0_i32_0 : i32, i32
  }
  func.func @transform_6(%arg0: i32) -> (i32, i32, i32) {
    %c0_i32 = arith.constant 0 : i32
    %c0_i32_0 = arith.constant 0 : i32
    %c0_i32_1 = arith.constant 0 : i32
    return %arg0, %c0_i32, %c0_i32_0 : i32, i32, i32
  }
}

</mosaic_0001>

<bundles_post_ra>
// kernel: tpu_custom_call.1
= control target key start
LH: loop header
LB: loop body
LE: loop exit
PB: predicated region body
PF: predicated region fallthrough
CT: control target
= control target key end

     0   :  { %s6504_s21 = smov 0   ;;  %s8385_s0 = inlined_call_operand.vmem [shape: f32[8,32,8], index: 0, kind: input, shape index: {}]   ;;  %s8386_s1 = inlined_call_operand.vmem [shape: f32[8,48,8], index: 1, kind: input, shape index: {}]   ;;  %s8387_s2 = inlined_call_operand.vmem [shape: f32[32,32], index: 2, kind: input, shape index: {}]   ;;  %s8388_s3 = inlined_call_operand.vmem [shape: f32[32,48], index: 3, kind: input, shape index: {}]   ;;  %s8389_s4 = inlined_call_operand.vmem [shape: f32[32,16], index: 4, kind: input, shape index: {}]   ;;  %s8390_s5 = inlined_call_operand.vmem [shape: f32[32,16], index: 5, kind: input, shape index: {}]   ;;  %s8391_s6 = inlined_call_operand.vmem [shape: f32[8,32,8], index: 6, kind: output, shape index: {}]  }
   0x1 LB: > { %s5491_s22 = sadd.s32 4294967295, %s6459_s21   ;;  %p5495_p0 = scmp.ge.s32.totalorder %s6459_s21, 1  ;;  %s6459_s21 = sphi %s6504_s21, %s16_s21  }
   0x2   : > { %p226_p1 = scmp.lt.s32.totalorder %s6459_s21, 3 }
   0x4   : > { %p227_p2 = pnand %p5495_p0, %p226_p1 }
   0x6   : > { %230 = sbr.rel (%p227_p2) target bundleno = 1469 (0x5bd), region = 44 }
   0xb   : > { %s5496_s23 = sshll.u32 %s5491_s22, 2  ;;  %v6515_v0 = vld [vmem:[%s8387_s2] sm:$0xff]  ;;  %vm309_vm0 = vcmask 261120   ;;  %v286_v9 = vld [vmem:[%s8387_s2 + $0x8] sm:$0xff]  ;;  %v287_v14 = vld [vmem:[%s8387_s2 + $0x10] sm:$0xff]  ;;  %vm686_vm1 = vcmask 392192  }
   0xc   : > { %p265_p3 = scmp.lt.s32.totalorder %s5496_s23, 7  ;;  %5924 = vmatprep.mubr.msk.f32.mxu0 %vm309_vm0, %v6515_v0  ;;  %5938 = vmatprep.mubr.msk.f32.mxu1 %vm309_vm0, %v6515_v0  ;;  %v288_v15 = vld [vmem:[%s8387_s2 + $0x18] sm:$0xff]  ;;  %v289_v32 = vld [vmem:[%s8388_s3] sm:$0xff]  ;;  %v290_v33 = vld [vmem:[%s8388_s3 + $0x8] sm:$0xff]  ;;  %vm1039_vm2 = vcmask 64512   ;;  %s6461_s27 = smov 112  }
   0xd   : > { %v291_v35 = vld [vmem:[%s8388_s3 + $0x10] sm:$0xff]  ;;  %v292_v38 = vld [vmem:[%s8388_s3 + $0x18] sm:$0xff]  ;;  %s6462_s28 = smov 16  }
   0xe   : > { %s8584_s23 = smov (!%p265_p3, %s5496_s23), 7 }
   0xf   : > { %s5698_s26 = sshll.u32 %s8584_s23, 5  ;;  %s6292_s10 = smul.u32 48, %s8584_s23 }
  0x10   : > { %s6529_s29 = scalar_lea.vmem %s8385_s0, %s5698_s26  ;;  %s8348_s25 = scalar_lea.vmem %s8391_s6, %s5698_s26 }
  0x11   : > { %v296_v1 = vld [vmem:[%s6529_s29 + $0x18] sm:$0xff]  ;;  %v295_v3 = vld [vmem:[%s6529_s29 + $0x10] sm:$0xff]  ;;  %v294_v5 = vld [vmem:[%s6529_s29 + $0x8] sm:$0xff]  ;;  %s6562_s15 = scalar_lea.vmem %s8386_s1, %s6292_s10 }
  0x12   : > { %v300_v2 = vld [vmem:[%s6529_s29 + $0x38] sm:$0xff]  ;;  %5916 = vmatprep.subr.mxu0 %v296_v1  ;;  %v299_v4 = vld [vmem:[%s6529_s29 + $0x30] sm:$0xff]  ;;  %v298_v6 = vld [vmem:[%s6529_s29 + $0x28] sm:$0xff] }
  0x13   : > { %5930 = vmatprep.subr.mxu1 %v300_v2  ;;  %5917 = vmatpush3.msra.mxu0 %v296_v1  ;;  %v293_v7 = vld [vmem:[%s6529_s29] sm:$0xff]  ;;  %v304_v10 = vld [vmem:[%s6529_s29 + $0x58] sm:$0xff]  ;;  %v303_v12 = vld [vmem:[%s6529_s29 + $0x50] sm:$0xff] }
  0x14   : > { %5931 = vmatpush3.msra.mxu1 %v300_v2  ;;  %5918 = vmatprep.subr.mxu0 %v295_v3  ;;  %v297_v8 = vld [vmem:[%s6529_s29 + $0x20] sm:$0xff]  ;;  %v308_v11 = vld [vmem:[%s6529_s29 + $0x78] sm:$0xff]  ;;  %v307_v13 = vld [vmem:[%s6529_s29 + $0x70] sm:$0xff] }
  0x15   : > { %5932 = vmatprep.subr.mxu1 %v299_v4  ;;  %5919 = vmatpush3.msra.mxu0 %v295_v3  ;;  %v302_v16 = vld [vmem:[%s6529_s29 + $0x48] sm:$0xff]  ;;  %v301_v18 = vld [vmem:[%s6529_s29 + $0x40] sm:$0xff]  ;;  %v673_v21 = vld [vmem:[%s6562_s15 + $0x58] sm:$0xff] }
  0x16   : > { %5933 = vmatpush3.msra.mxu1 %v299_v4  ;;  %5920 = vmatprep.subr.mxu0 %v294_v5  ;;  %v306_v17 = vld [vmem:[%s6529_s29 + $0x68] sm:$0xff]  ;;  %v305_v19 = vld [vmem:[%s6529_s29 + $0x60] sm:$0xff]  ;;  %v672_v23 = vld [vmem:[%s6562_s15 + $0x50] sm:$0xff] }
  0x17   : > { %5934 = vmatprep.subr.mxu1 %v298_v6  ;;  %5921 = vmatpush3.msra.mxu0 %v294_v5  ;;  %v667_v20 = vld [vmem:[%s6562_s15 + $0x28] sm:$0xff]  ;;  %v666_v22 = vld [vmem:[%s6562_s15 + $0x20] sm:$0xff]  ;;  %v665_v24 = vld [vmem:[%s6562_s15 + $0x18] sm:$0xff] }
  0x18   : > { %5935 = vmatpush3.msra.mxu1 %v298_v6  ;;  %5922 = vmatprep.subr.mxu0 %v293_v7  ;;  %v671_v25 = vld [vmem:[%s6562_s15 + $0x48] sm:$0xff]  ;;  %v664_v26 = vld [vmem:[%s6562_s15 + $0x10] sm:$0xff]  ;;  %v670_v27 = vld [vmem:[%s6562_s15 + $0x40] sm:$0xff] }
  0x19   : > { %5936 = vmatprep.subr.mxu1 %v297_v8  ;;  %5923 = vmatpush3.msra.mxu0 %v293_v7  ;;  %v663_v28 = vld [vmem:[%s6562_s15 + $0x8] sm:$0xff]  ;;  %v669_v29 = vld [vmem:[%s6562_s15 + $0x38] sm:$0xff]  ;;  %v662_v30 = vld [vmem:[%s6562_s15] sm:$0xff] }
  0x1a   : > { %5937 = vmatpush3.msra.mxu1 %v297_v8  ;;  %5925 = vmatmul.mubr.msk.f32.vlgmr.msra.gmra.mxu0 %vm309_vm0, %v286_v9  ;;  %v668_v31 = vld [vmem:[%s6562_s15 + $0x30] sm:$0xff]  ;;  %v679_v34 = vld [vmem:[%s6562_s15 + $0x88] sm:$0xff]  ;;  %v678_v36 = vld [vmem:[%s6562_s15 + $0x80] sm:$0xff] }
  0x1b   : > { %5944 = vmatprep.subr.mxu0 %v304_v10  ;;  %5958 = vmatprep.subr.mxu1 %v308_v11  ;;  %v685_v37 = vld [vmem:[%s6562_s15 + $0xb8] sm:$0xff]  ;;  %v684_v40 = vld [vmem:[%s6562_s15 + $0xb0] sm:$0xff]  ;;  %v683_v42 = vld [vmem:[%s6562_s15 + $0xa8] sm:$0xff] }
  0x1c   : > { %5939 = vmatmul.mubr.msk.f32.vlgmr.msra.gmra.mxu1 %vm309_vm0, %v286_v9  ;;  %5945 = vmatpush3.msra.mxu0 %v304_v10  ;;  %v677_v39 = vld [vmem:[%s6562_s15 + $0x78] sm:$0xff]  ;;  %v676_v41 = vld [vmem:[%s6562_s15 + $0x70] sm:$0xff]  ;;  %v675_v43 = vld [vmem:[%s6562_s15 + $0x68] sm:$0xff] }
  0x1d   : > { %5959 = vmatpush3.msra.mxu1 %v308_v11  ;;  %5946 = vmatprep.subr.mxu0 %v303_v12  ;;  %v682_v44 = vld [vmem:[%s6562_s15 + $0xa0] sm:$0xff]  ;;  %v681_v46 = vld [vmem:[%s6562_s15 + $0x98] sm:$0xff]  ;;  %v680_v47 = vld [vmem:[%s6562_s15 + $0x90] sm:$0xff] }
  0x1e   : > { %5960 = vmatprep.subr.mxu1 %v307_v13  ;;  %5927 = vmatprep.mubr.msk.f32.mxu0 %vm309_vm0, %v287_v14  ;;  %v674_v45 = vld [vmem:[%s6562_s15 + $0x60] sm:$0xff] }
  0x1f   : > { %5947 = vmatpush3.msra.mxu0 %v303_v12  ;;  %5961 = vmatpush3.msra.mxu1 %v307_v13 }
  0x20   : > { %5928 = vmatmul.mubr.msk.f32.gmra.mxu0 %vm309_vm0, %v288_v15  ;;  %5941 = vmatprep.mubr.msk.f32.mxu1 %vm309_vm0, %v287_v14 }
  0x21   : > { %5948 = vmatprep.subr.mxu0 %v302_v16  ;;  %5962 = vmatprep.subr.mxu1 %v306_v17 }
  0x22   : > { %5942 = vmatmul.mubr.msk.f32.gmra.mxu1 %vm309_vm0, %v288_v15  ;;  %5949 = vmatpush3.msra.mxu0 %v302_v16 }
  0x23   : > { %5963 = vmatpush3.msra.mxu1 %v306_v17  ;;  %5950 = vmatprep.subr.mxu0 %v301_v18 }
  0x24   : > { %5964 = vmatprep.subr.mxu1 %v305_v19  ;;  %5951 = vmatpush3.msra.mxu0 %v301_v18 }
  0x25   : > { %5952 = vmatprep.mubr.msk.f32.mxu0 %vm309_vm0, %v6515_v0  ;;  %5965 = vmatpush3.msra.mxu1 %v305_v19 }
  0x26   : > { %5953 = vmatmul.mubr.msk.f32.vlgmr.msra.gmra.mxu0 %vm309_vm0, %v286_v9  ;;  %5966 = vmatprep.mubr.msk.f32.mxu1 %vm309_vm0, %v6515_v0 }
  0x27   : > { %5972 = vmatprep.subr.mxu0 %v667_v20  ;;  %5990 = vmatprep.subr.mxu1 %v673_v21 }
  0x28   : > { %5967 = vmatmul.mubr.msk.f32.vlgmr.msra.gmra.mxu1 %vm309_vm0, %v286_v9  ;;  %5973 = vmatpush3.msra.mxu0 %v667_v20 }
  0x29   : > { %5991 = vmatpush3.msra.mxu1 %v673_v21  ;;  %5974 = vmatprep.subr.mxu0 %v666_v22 }
  0x2a   : > { %5992 = vmatprep.subr.mxu1 %v672_v23  ;;  %5975 = vmatpush3.msra.mxu0 %v666_v22 }
  0x2b   : > { %5993 = vmatpush3.msra.mxu1 %v672_v23  ;;  %5976 = vmatprep.subr.mxu0 %v665_v24 }
  0x2c   : > { %5994 = vmatprep.subr.mxu1 %v671_v25  ;;  %5955 = vmatprep.mubr.msk.f32.mxu0 %vm309_vm0, %v287_v14 }
  0x2d   : > { %5977 = vmatpush3.msra.mxu0 %v665_v24  ;;  %5995 = vmatpush3.msra.mxu1 %v671_v25 }
  0x2e   : > { %5956 = vmatmul.mubr.msk.f32.gmra.mxu0 %vm309_vm0, %v288_v15  ;;  %5978 = vmatprep.subr.mxu0 %v664_v26 }
  0x2f   : > { %5996 = vmatprep.subr.mxu1 %v670_v27  ;;  %5969 = vmatprep.mubr.msk.f32.mxu1 %vm309_vm0, %v287_v14 }
  0x30   : > { %5979 = vmatpush3.msra.mxu0 %v664_v26  ;;  %5997 = vmatpush3.msra.mxu1 %v670_v27 }
  0x31   : > { %5980 = vmatprep.subr.mxu0 %v663_v28  ;;  %5970 = vmatmul.mubr.msk.f32.gmra.mxu1 %vm309_vm0, %v288_v15 }
  0x32   : > { %5998 = vmatprep.subr.mxu1 %v669_v29  ;;  %5981 = vmatpush3.msra.mxu0 %v663_v28 }
  0x33   : > { %5999 = vmatpush3.msra.mxu1 %v669_v29  ;;  %5982 = vmatprep.subr.mxu0 %v662_v30 }
  0x34   : > { %6000 = vmatprep.subr.mxu1 %v668_v31  ;;  %5983 = vmatpush3.msra.mxu0 %v662_v30 }
  0x35   : > { %5984 = vmatprep.mubr.msk.f32.mxu0 %vm686_vm1, %v289_v32  ;;  %6001 = vmatpush3.msra.mxu1 %v668_v31 }
  0x36   : > { %6002 = vmatprep.mubr.msk.f32.mxu1 %vm686_vm1, %v289_v32  ;;  %5985 = vmatmul.mubr.msk.f32.vlgmr.msra.gmra.mxu0 %vm686_vm1, %v290_v33 }
  0x37   : > { %6003 = vmatmul.mubr.msk.f32.vlgmr.msra.gmra.mxu1 %vm686_vm1, %v290_v33  ;;  %6008 = vmatprep.subr.mxu0 %v679_v34 }
  0x38   : > { %5987 = vmatprep.mubr.msk.f32.mxu0 %vm686_vm1, %v291_v35  ;;  %6005 = vmatprep.mubr.msk.f32.mxu1 %vm686_vm1, %v291_v35 }
  0x39   : > { %6009 = vmatpush3.msra.mxu0 %v679_v34  ;;  %6026 = vmatprep.subr.mxu1 %v685_v37 }
  0x3a   : > { %6010 = vmatprep.subr.mxu0 %v678_v36  ;;  %5988 = vmatmul.mubr.msk.f32.gmra.mxu0 %vm686_vm1, %v292_v38 }
  0x3b   : > { %6006 = vmatmul.mubr.msk.f32.gmra.mxu1 %vm686_vm1, %v292_v38  ;;  %6011 = vmatpush3.msra.mxu0 %v678_v36 }
  0x3c   : > { %6027 = vmatpush3.msra.mxu1 %v685_v37  ;;  %6012 = vmatprep.subr.mxu0 %v677_v39 }
  0x3d   : > { %6028 = vmatprep.subr.mxu1 %v684_v40  ;;  %6013 = vmatpush3.msra.mxu0 %v677_v39 }
  0x3e   : > { %6029 = vmatpush3.msra.mxu1 %v684_v40  ;;  %6014 = vmatprep.subr.mxu0 %v676_v41 }
  0x3f   : > { %6030 = vmatprep.subr.mxu1 %v683_v42  ;;  %6015 = vmatpush3.msra.mxu0 %v676_v41 }
  0x40   : > { %6031 = vmatpush3.msra.mxu1 %v683_v42  ;;  %6016 = vmatprep.subr.mxu0 %v675_v43 }
  0x41   : > { %6032 = vmatprep.subr.mxu1 %v682_v44  ;;  %6017 = vmatpush3.msra.mxu0 %v675_v43 }
  0x42   : > { %6033 = vmatpush3.msra.mxu1 %v682_v44  ;;  %6018 = vmatprep.subr.mxu0 %v674_v45 }
  0x43   : > { %6034 = vmatprep.subr.mxu1 %v681_v46  ;;  %6019 = vmatpush3.msra.mxu0 %v674_v45 }
  0x44   : > { %6020 = vmatprep.mubr.msk.f32.mxu0 %vm686_vm1, %v289_v32  ;;  %6035 = vmatpush3.msra.mxu1 %v681_v46 }
  0x45   : > { %6021 = vmatmul.mubr.msk.f32.vlgmr.msra.gmra.mxu0 %vm686_vm1, %v290_v33  ;;  %6036 = vmatprep.subr.mxu1 %v680_v47 }
  0x46   : > { %6038 = vmatprep.mubr.msk.f32.mxu1 %vm686_vm1, %v289_v32  ;;  %6037 = vmatpush3.msra.mxu1 %v680_v47 }
  0x47   : > { %6023 = vmatprep.mubr.msk.f32.mxu0 %vm686_vm1, %v291_v35  ;;  %6039 = vmatmul.mubr.msk.f32.vlgmr.msra.gmra.mxu1 %vm686_vm1, %v290_v33 }
  0x48   : > { %6041 = vmatprep.mubr.msk.f32.mxu1 %vm686_vm1, %v291_v35 }
  0x49   : > { %6024 = vmatmul.mubr.msk.f32.gmra.mxu0 %vm686_vm1, %v292_v38 }
  0x4b   : > { %6042 = vmatmul.mubr.msk.f32.gmra.mxu1 %vm686_vm1, %v292_v38 }
  0xda   : > { %v5926_v48 = vpop.f32.mrf.mxu0 }
  0xdc   : > { %v5940_v49 = vpop.f32.mrf.mxu1  ;;  %v388_v50 = vpop.f32.mrf.mxu0 }
  0xdd   : > { %6052 = vmatprep.mubr.msk.f32.mxu0 %vm1039_vm2, %v388_v50 }
  0xde   : > { %v473_v51 = vpop.f32.mrf.mxu1 }
  0xdf   : > { %6066 = vmatprep.mubr.msk.f32.mxu1 %vm1039_vm2, %v473_v51 }
  0xe0   : > { %v5929_v53 = vpop.f32.mrf.mxu0 }
  0xe2   : > { %v5943_v52 = vpop.f32.mrf.mxu1  ;;  %v398_v55 = vpop.f32.mrf.mxu0 }
  0xe4   : > { %v483_v54 = vpop.f32.mrf.mxu1 }
  0xe6   : > { %v6634_v57 = vpop.f32.mrf.mxu0 }
  0xe8   : > { %v6632_v56 = vpop.f32.mrf.mxu1  ;;  %v558_v59 = vpop.f32.mrf.mxu0 }
  0xea   : > { %v643_v58 = vpop.f32.mrf.mxu1 }
  0xee   : > { %v6636_v60 = vpop.f32.mrf.mxu0 }
  0xf0   : > { %v568_v63 = vpop.f32.mrf.mxu0 }
  0xf1   : > { %v6638_v61 = vpop.f32.mrf.mxu1 }
  0xf3   : > { %v6640_v62 = vpop.f32.mrf.mxu1 }
  0xf6   : > { %v6642_v0 = vpop.f32.mrf.mxu0 }
  0xf7   : > { %8469 = vst [vmem:[#allocation2_spill] sm:$0xff] %v6642_v0  ;;  %v6644_v1 = vpop.f32.mrf.mxu1 }
  0xf8   : > { %8470 = vst [vmem:[#allocation3_spill] sm:$0xff] %v6644_v1  ;;  %v6646_v2 = vpop.f32.mrf.mxu0 }
  0xf9   : > { %8471 = vst [vmem:[#allocation4_spill] sm:$0xff] %v6646_v2  ;;  %v6648_v3 = vpop.f32.mrf.mxu1 }
  0xfa   : > { %8472 = vst [vmem:[#allocation5_spill] sm:$0xff] %v6648_v3  ;;  %v6650_v4 = vpop.f32.mrf.mxu0 }
  0xfb   : > { %8473 = vst [vmem:[#allocation6_spill] sm:$0xff] %v6650_v4  ;;  %v6652_v5 = vpop.f32.mrf.mxu1  ;;  %6044 = vmatprep.subr.msk.mxu0 %vm1039_vm2, %v6650_v4 }
  0xfc   : > { %8474 = vst [vmem:[#allocation7_spill] sm:$0xff] %v6652_v5  ;;  %6058 = vmatprep.subr.msk.mxu1 %vm1039_vm2, %v6652_v5  ;;  %v6658_v6 = vpop.f32.mrf.mxu0  ;;  %6045 = vmatpush3.xpose.msk.msra.mxu0 %vm1039_vm2, %v6650_v4 }
  0xfd   : > { %8475 = vst [vmem:[#allocation8_spill] sm:$0xff] %v6658_v6  ;;  %6059 = vmatpush3.xpose.msk.msra.mxu1 %vm1039_vm2, %v6652_v5  ;;  %v6664_v7 = vpop.f32.mrf.mxu1  ;;  %6046 = vmatprep.subr.msk.mxu0 %vm1039_vm2, %v6658_v6 }
  0xfe   : > { %8476 = vst [vmem:[#allocation9_spill] sm:$0xff] %v6664_v7  ;;  %6060 = vmatprep.subr.msk.mxu1 %vm1039_vm2, %v6664_v7 }
 0x100   : > { %6047 = vmatpush3.xpose.msk.msra.mxu0 %vm1039_vm2, %v6658_v6 }
 0x101   : > { %6061 = vmatpush3.xpose.msk.msra.mxu1 %vm1039_vm2, %v6664_v7  ;;  %6048 = vmatprep.subr.msk.mxu0 %vm1039_vm2, %v6642_v0 }
 0x102   : > { %6062 = vmatprep.subr.msk.mxu1 %vm1039_vm2, %v6644_v1 }
 0x104   : > { %6049 = vmatpush3.xpose.msk.msra.mxu0 %vm1039_vm2, %v6642_v0 }
 0x105   : > { %v6678_v8 = vpop.f32.mrf.mxu0  ;;  %6063 = vmatpush3.xpose.msk.msra.mxu1 %vm1039_vm2, %v6644_v1  ;;  %6050 = vmatprep.subr.msk.mxu0 %vm1039_vm2, %v6646_v2 }
 0x106   : > { %8477 = vst [vmem:[#allocation10_spill] sm:$0xff] %v6678_v8  ;;  %6064 = vmatprep.subr.msk.mxu1 %vm1039_vm2, %v6648_v3 }
 0x107   : > { %v6688_v9 = vpop.f32.mrf.mxu0  ;;  %v6690_v10 = vpop.f32.mrf.mxu1 }
 0x108   : > { %8478 = vst [vmem:[#allocation11_spill] sm:$0xff] %v6688_v9  ;;  %8479 = vst [vmem:[#allocation12_spill] sm:$0xff] %v6690_v10  ;;  %6051 = vmatpush3.xpose.msk.msra.mxu0 %vm1039_vm2, %v6646_v2 }
 0x109   : > { %v6692_v11 = vpop.f32.mrf.mxu0  ;;  %6065 = vmatpush3.xpose.msk.msra.mxu1 %vm1039_vm2, %v6648_v3  ;;  %v6698_v12 = vpop.f32.mrf.mxu1 }
 0x10a   : > { %8480 = vst [vmem:[#allocation13_spill] sm:$0xff] %v6692_v11  ;;  %8481 = vst [vmem:[#allocation14_spill] sm:$0xff] %v6698_v12  ;;  %6072 = vmatprep.subr.msk.mxu0 %vm1039_vm2, %v6692_v11 }
 0x10b   : > { %v6702_v13 = vpop.f32.mrf.mxu1  ;;  %6053 = vmatmul.mubr.msk.f32.vlgmr.msra.gmra.mxu0 %vm1039_vm2, %v5926_v48  ;;  %v6709_v14 = vpop.f32.mrf.mxu0 }
 0x10c   : > { %8482 = vst [vmem:[#allocation15_spill] sm:$0xff] %v6702_v13  ;;  %6067 = vmatmul.mubr.msk.f32.vlgmr.msra.gmra.mxu1 %vm1039_vm2, %v5940_v49  ;;  %6086 = vmatprep.subr.msk.mxu1 %vm1039_vm2, %v6702_v13  ;;  %8483 = vst [vmem:[#allocation16_spill] sm:$0xff] %v6709_v14 }
 0x10d   : > { %6055 = vmatprep.mubr.msk.f32.mxu0 %vm1039_vm2, %v398_v55  ;;  %6069 = vmatprep.mubr.msk.f32.mxu1 %vm1039_vm2, %v483_v54  ;;  %v6714_v15 = vpop.f32.mrf.mxu1  ;;  %v8405_v55 = vmov 920167782  }
 0x10e   : > { %6073 = vmatpush3.xpose.msk.msra.mxu0 %vm1039_vm2, %v6692_v11  ;;  %8484 = vst [vmem:[#allocation17_spill] sm:$0xff] %v6714_v15  ;;  %6087 = vmatpush3.xpose.msk.msra.mxu1 %vm1039_vm2, %v6702_v13 }
 0x10f   : > { %6074 = vmatprep.subr.msk.mxu0 %vm1039_vm2, %v6709_v14  ;;  %6056 = vmatmul.mubr.msk.f32.gmra.mxu0 %vm1039_vm2, %v5929_v53 }
 0x110   : > { %6070 = vmatmul.mubr.msk.f32.gmra.mxu1 %vm1039_vm2, %v5943_v52  ;;  %6088 = vmatprep.subr.msk.mxu1 %vm1039_vm2, %v6714_v15 }
 0x111   : > { %6080 = vmatprep.mubr.msk.f32.mxu0 %vm1039_vm2, %v558_v59  ;;  %6094 = vmatprep.mubr.msk.f32.mxu1 %vm1039_vm2, %v643_v58 }
 0x112   : > { %6075 = vmatpush3.xpose.msk.msra.mxu0 %vm1039_vm2, %v6709_v14  ;;  %6089 = vmatpush3.xpose.msk.msra.mxu1 %vm1039_vm2, %v6714_v15 }
 0x113   : > { %6076 = vmatprep.subr.msk.mxu0 %vm1039_vm2, %v6678_v8  ;;  %6090 = vmatprep.subr.msk.mxu1 %vm1039_vm2, %v6690_v10 }
 0x116   : > { %6077 = vmatpush3.xpose.msk.msra.mxu0 %vm1039_vm2, %v6678_v8  ;;  %6091 = vmatpush3.xpose.msk.msra.mxu1 %vm1039_vm2, %v6690_v10 }
 0x117   : > { %6078 = vmatprep.subr.msk.mxu0 %vm1039_vm2, %v6688_v9  ;;  %6092 = vmatprep.subr.msk.mxu1 %vm1039_vm2, %v6698_v12 }
 0x11a   : > { %6079 = vmatpush3.xpose.msk.msra.mxu0 %vm1039_vm2, %v6688_v9  ;;  %6093 = vmatpush3.xpose.msk.msra.mxu1 %vm1039_vm2, %v6698_v12 }
 0x11b   : > { %6100 = vmatprep.subr.mxu0 %v6642_v0  ;;  %6107 = vmatprep.subr.mxu1 %v6644_v1 }
 0x11d   : > { %6081 = vmatmul.mubr.msk.f32.vlgmr.msra.gmra.mxu0 %vm1039_vm2, %v6634_v57  ;;  %6095 = vmatmul.mubr.msk.f32.vlgmr.msra.gmra.mxu1 %vm1039_vm2, %v6632_v56  ;;  %v8399_v57 = vmov 1326507024  }
 0x11e   : > { %6083 = vmatprep.mubr.msk.f32.mxu0 %vm1039_vm2, %v568_v63  ;;  %6097 = vmatprep.mubr.msk.f32.mxu1 %vm1039_vm2, %v6640_v62 }
 0x11f   : > { %6101 = vmatpush3.msra.mxu0 %v6642_v0  ;;  %6108 = vmatpush3.msra.mxu1 %v6644_v1 }
 0x120   : > { %6102 = vmatprep.subr.mxu0 %v6646_v2  ;;  %6109 = vmatprep.subr.mxu1 %v6648_v3 }
 0x121   : > { %6103 = vmatpush3.msra.mxu0 %v6646_v2  ;;  %6110 = vmatpush3.msra.mxu1 %v6648_v3 }
 0x122   : > { %6084 = vmatmul.mubr.msk.f32.gmra.mxu0 %vm1039_vm2, %v6636_v60  ;;  %6098 = vmatmul.mubr.msk.f32.gmra.mxu1 %vm1039_vm2, %v6638_v61  ;;  %v8403_v61 = vmov 2102212464  }
 0x123   : > { %6114 = vmatprep.subr.mxu0 %v6678_v8  ;;  %6121 = vmatprep.subr.mxu1 %v6690_v10 }
 0x1cb   : > { %v6054_v16 = vpop.f32.mrf.mxu0 }
 0x1cc   : > { %v6767_v17 = vpop.f32.mrf.mxu1 }
 0x1cd   : > { %v6769_v18 = vpop.f32.mrf.mxu0 }
 0x1ce   : > { %v6771_v19 = vpop.f32.mrf.mxu1 }
 0x1cf   : > { %v6057_v20 = vpop.f32.mrf.mxu0 }
 0x1d0   : > { %v6071_v21 = vpop.f32.mrf.mxu1  ;;  %1486 = vrot.lane.b32.xlu0 %v6057_v20, %s6461_s27 }
 0x1d1   : > { %1490 = vrot.lane.b32.xlu1 %v6071_v21, %s6461_s27  ;;  %v1140_v22 = vpop.f32.mrf.mxu0 }
 0x1d2   : > { %v1249_v23 = vpop.f32.mrf.mxu1 }
 0x1d4   : > { %1484 = vrot.lane.b32.xlu0 %v1140_v22, %s6461_s27 }
 0x1d5   : > { %1488 = vrot.lane.b32.xlu1 %v1249_v23, %s6461_s27 }
 0x1dd   : > { %v6777_v24 = vpop.f32.mrf.mxu0  ;;  %v6779_v25 = vpop.f32.mrf.mxu1 }
 0x1df   : > { %v6781_v26 = vpop.f32.mrf.mxu0  ;;  %v6783_v27 = vpop.f32.mrf.mxu1 }
 0x1e2   : > { %v6085_v28 = vpop.f32.mrf.mxu0  ;;  %v6099_v29 = vpop.f32.mrf.mxu1 }
 0x1e3   : > { %1494 = vrot.lane.b32.xlu1 %v6085_v28, %s6461_s27 }
 0x1e4   : > { %v1358_v30 = vpop.f32.mrf.mxu0  ;;  %v1467_v31 = vpop.f32.mrf.mxu1 }
 0x1e5   : > { %1492 = vrot.lane.b32.xlu0 %v1358_v30, %s6461_s27 }
 0x1e7   : > { %1498 = vrot.lane.b32.xlu1 %v6099_v29, %s6461_s27 }
 0x1e9   : > { %1496 = vrot.lane.b32.xlu0 %v1467_v31, %s6461_s27 }
 0x1eb   : > { %1518 = vrot.lane.b32.xlu1 %v6057_v20, %s6462_s28 }
 0x1ed   : > { %1516 = vrot.lane.b32.xlu0 %v1140_v22, %s6462_s28 }
 0x1ef   : > { %1522 = vrot.lane.b32.xlu1 %v6071_v21, %s6462_s28  ;;  %v8395_v21 = vmov 2131351028  }
 0x1f1   : > { %1520 = vrot.lane.b32.xlu0 %v1249_v23, %s6462_s28 }
 0x1f3   : > { %1526 = vrot.lane.b32.xlu1 %v6085_v28, %s6462_s28 }
 0x1f5   : > { %1524 = vrot.lane.b32.xlu0 %v1358_v30, %s6462_s28 }
 0x1f7   : > { %1530 = vrot.lane.b32.xlu1 %v6099_v29, %s6462_s28 }
 0x1f9   : > { %1528 = vrot.lane.b32.xlu0 %v1467_v31, %s6462_s28  ;;  %v8393_v31 = vmov 683565275  }
 0x242   : > { %v1487_v36 = vpop.permute.xlu0 %1486 }
 0x243   : > { %v6797_v32 = vpop.permute.xlu1 %1490  ;;  %v1509_v48 = vsub.f32 %v6054_v16, %v1487_v36 }
 0x245   : > { %v6814_v51 = vmul.f32 2.0, %v1509_v48 }
 0x246   : > { %v6807_v40 = vpop.permute.xlu0 %1484 }
 0x247   : > { %v6799_v33 = vpop.permute.xlu1 %1488  ;;  %8485 = vst [vmem:[#allocation18_spill] sm:$0xff] %v6814_v51  ;;  %v1565_v54 = vand.u32 2147483647, %v6814_v51 }
 0x249   : > { %v1573_v29 = vsub.f32 0.0, %v1565_v54 }
 0x24b   : > { %v1582_v54 = vmul.f32 1.442695, %v1573_v29 }
 0x24d   : > { %6341 = vpow2.f32 %v1582_v54  ;;  %v1511_v54 = vsub.f32 %v6767_v17, %v6797_v32 }
 0x255   : > { %v6801_v34 = vpop.permute.xlu1 %1494 }
 0x257   : > { %v6810_v43 = vpop.permute.xlu0 %1492 }
 0x259   : > { %v6803_v35 = vpop.permute.xlu1 %1498 }
 0x25b   : > { %v6812_v46 = vpop.permute.xlu0 %1496 }
 0x25d   : > { %v1519_v37 = vpop.permute.xlu1 %1518 }
 0x25e   : > { %v1541_v38 = vadd.f32 %v6054_v16, %v1519_v37  ;;  %v8397_v16 = vmov 2475754826  }
 0x25f   : > { %v1517_v50 = vpop.permute.xlu0 %1516 }
 0x260   : > { %v6805_v39 = vmul.f32 2.0, %v1541_v38  ;;  %v1540_v53 = vadd.f32 %v1517_v50, %v6769_v18 }
 0x262   : > { %v1742_v41 = vand.u32 2139095040, %v6805_v39  ;;  %v8392_v59 = vand.u32 2147483647, %v6805_v39  ;;  %v6824_v63 = vmul.f32 2.0, %v1540_v53  ;;  %v1523_v53 = vpop.permute.xlu1 %1522 }
 0x264   : > { %v1743_v42 = vshrl.u32 %v1742_v41, 23  ;;  %8486 = vst [vmem:[#allocation19_spill] sm:$0xff] %v6824_v63 }
 0x266   : > { %v5572_v44 = vadd.s32 4294967169, %v1743_v42  ;;  %v1746_v42 = vand.u32 8388607, %v8392_v59 }
 0x268   : > { %v1749_v45 = vadd.s32 1, %v5572_v44  ;;  %v1639_v44 = vand.u32 2139095040, %v6824_v63 }
 0x26a   : > { %vm1750_vm3 = vcmp.gt.s32.totalorder %v1749_v45, 0 }
 0x26b   : > { %v1751_v47 = vsel %vm1750_vm3, %v1749_v45, 0 }
 0x26c   : > { %v1753_v49 = vand.u32 31, %v1751_v47  ;;  %v6821_v60 = vshrl.u32 %v1751_v47, 5 }
 0x26e   : > { %v1754_v52 = vsub.s32 32, %v1753_v49  ;;  %v1765_v62 = vshll.u32 %v8403_v61, %v1753_v49  ;;  %v1768_v28 = vshll.u32 %v8405_v55, %v1753_v49  ;;  %v1756_v36 = vshll.u32 %v8393_v31, %v1753_v49 }
 0x26f   : > { %v1759_v37 = vshll.u32 %v8397_v16, %v1753_v49  ;;  %v1762_v38 = vshll.u32 %v8395_v21, %v1753_v49  ;;  %vm1774_vm4 = vcmp.lt.s32.totalorder %v6821_v60, 4  ;;  %vm1771_vm5 = vcmp.lt.s32.totalorder %v6821_v60, 1 }
 0x270   : > { %v1766_v56 = vshrl.u32 %v8405_v55, %v1754_v52  ;;  %v1769_v58 = vshrl.u32 %v8399_v57, %v1754_v52  ;;  %v1757_v20 = vshrl.u32 %v8397_v16, %v1754_v52  ;;  %v1760_v22 = vshrl.u32 %v8395_v21, %v1754_v52 }
 0x271   : > { %v1763_v23 = vshrl.u32 %v8403_v61, %v1754_v52  ;;  %vm1773_vm6 = vcmp.lt.s32.totalorder %v6821_v60, 3  ;;  %v1640_v49 = vshrl.u32 %v1639_v44, 23  ;;  %vm1772_vm7 = vcmp.lt.s32.totalorder %v6821_v60, 2 }
 0x272   : > { %v1767_v30 = vor.u32 %v1766_v56, %v1765_v62  ;;  %v1770_v41 = vor.u32 %v1769_v58, %v1768_v28  ;;  %v1758_v45 = vor.u32 %v1757_v20, %v1756_v36  ;;  %v1761_v47 = vor.u32 %v1760_v22, %v1759_v37 }
 0x273   : > { %v1764_v48 = vor.u32 %v1763_v23, %v1762_v38  ;;  %v1747_v58 = vor.u32 8388608, %v1746_v42  ;;  %v1543_v22 = vadd.f32 %v6767_v17, %v1523_v53  ;;  %v5568_v36 = vadd.s32 4294967169, %v1640_v49 }
 0x274   : > { %v1780_v50 = vsel %vm1774_vm4, %v1767_v30, 920167782  ;;  %v1784_v56 = vsel %vm1774_vm4, %v1770_v41, 1326507024  ;;  %v1779_v62 = vsel %vm1771_vm5, %v1758_v45, %v1761_v47  ;;  %v1510_v49 = vsub.f32 %v6771_v19, %v6799_v33 }
 0x275   : > { %v1781_v20 = vsel %vm1773_vm6, %v1764_v48, %v1780_v50  ;;  %v1783_v23 = vsel %vm1771_vm5, %v1761_v47, %v1764_v48  ;;  %v1785_v28 = vsel %vm1773_vm6, %v1767_v30, %v1784_v56  ;;  %v1787_v38 = vshll.u32 %v1747_v58, 8 }
 0x276   : > { %v1782_v29 = vsel %vm1772_vm7, %v1779_v62, %v1781_v20  ;;  %v1786_v37 = vsel %vm1772_vm7, %v1783_v23, %v1785_v28  ;;  %v6857_v41 = vmul.f32 2.0, %v1543_v22  ;;  %v1646_v30 = vadd.s32 1, %v5568_v36 }
 0x277   : > { %v6859_v42 = vmul.u32.u64.low %v1787_v38, %v1782_v29  ;;  %v6860_v44 = vmul.u32.u64.high %v1787_v38, %v1782_v29, %v6859_v42  ;;  %v6863_v50 = vmul.u32.u64.low %v1787_v38, %v1786_v37  ;;  %v6864_v53 = vmul.u32.u64.high %v1787_v38, %v1786_v37, %v6863_v50 }
 0x278   : > { %8487 = vst [vmem:[#allocation20_spill] sm:$0xff] %v6857_v41  ;;  %v1948_v56 = vand.u32 2139095040, %v6857_v41  ;;  %v1508_v58 = vsub.f32 %v6769_v18, %v6807_v40  ;;  %v1776_v62 = vsel %vm1774_vm4, %v1764_v48, 2102212464  ;;  %v1755_v20 = vshrl.u32 %v8393_v31, %v1754_v52  ;;  %v6887_v48 = vpop.eup %6341 }
 0x279   : > { %vm1647_vm8 = vcmp.gt.s32.totalorder %v1646_v30, 0  ;;  %v6876_v22 = vmul.f32 2.0, %v1511_v54  ;;  %v6878_v28 = vmul.f32 2.0, %v1510_v49  ;;  %v1777_v33 = vsel %vm1773_vm6, %v1761_v47, %v1776_v62 }
 0x27a   : > { %v1949_v23 = vshrl.u32 %v1948_v56, 23  ;;  %v6880_v17 = vmul.f32 2.0, %v1508_v58  ;;  %v1775_v32 = vsel %vm1771_vm5, %v1755_v20, %v1758_v45  ;;  %v1797_v18 = vadd.s32 1, %v6860_v44 }
 0x27b   : > { %8488 = vst [vmem:[#allocation21_spill] sm:$0xff] %v6876_v22  ;;  %8489 = vst [vmem:[#allocation22_spill] sm:$0xff] %v6878_v28  ;;  %v1648_v40 = vsel %vm1647_vm8, %v1646_v30, 0  ;;  %vm1796_vm9 = vc.u32 %v6864_v53, %v6859_v42  ;;  %v1567_v52 = vand.u32 2147483647, %v6876_v22  ;;  %v1778_v29 = vsel %vm1772_vm7, %v1775_v32, %v1777_v33  ;;  %v1527_v22 = vpop.permute.xlu1 %1526 }
 0x27c   : > { %8490 = vst [vmem:[#allocation23_spill] sm:$0xff] %v6880_v17  ;;  %v5580_v36 = vadd.s32 4294967169, %v1949_v23  ;;  %v1566_v37 = vand.u32 2147483647, %v6878_v28  ;;  %v1564_v45 = vand.u32 2147483647, %v6880_v17  ;;  %v1605_v47 = vmul.f32 %v6887_v48, %v6887_v48  ;;  %v1521_v23 = vpop.permute.xlu0 %1520 }
 0x27d   : > { %v1650_v50 = vand.u32 31, %v1648_v40  ;;  %v1798_v30 = vsel %vm1796_vm9, %v1797_v18, %v6860_v44  ;;  %v1794_v54 = vmul.u32 %v1787_v38, %v1778_v29  ;;  %v1575_v56 = vsub.f32 0.0, %v1567_v52 }
 0x27e   : > { %v1955_v49 = vadd.s32 1, %v5580_v36  ;;  %v1574_v58 = vsub.f32 0.0, %v1566_v37  ;;  %v1572_v62 = vsub.f32 0.0, %v1564_v45  ;;  %v1613_v60 = vadd.f32 1.0, %v1605_v47 }
 0x27f   : > { %v1799_v20 = vadd.s32 %v1798_v30, %v1794_v54  ;;  %v6899_v59 = vsub.s32 32, %v1650_v50  ;;  %v1586_v32 = vmul.f32 1.442695, %v1575_v56  ;;  %v1513_v38 = vsub.f32 %v6777_v24, %v6801_v34 }
 0x280   : > { %vm1956_vm10 = vcmp.gt.s32.totalorder %v1955_v49, 0  ;;  %v1584_v33 = vmul.f32 1.442695, %v1574_v58  ;;  %v1580_v31 = vmul.f32 1.442695, %v1572_v62  ;;  %v1542_v18 = vadd.f32 %v1521_v23, %v6771_v19 }
 0x281   : > { %v1800_v21 = vadd.s32 536870912, %v1799_v20  ;;  %v1663_v16 = vshrl.u32 %v8405_v55, %v6899_v59  ;;  %v1666_v44 = vshrl.u32 %v8399_v57, %v6899_v59  ;;  %6343 = vrcp.f32 %v1613_v60 }
 0x282   : > { %v6909_v29 = vshrl.u32 %v1648_v40, 5  ;;  %v1662_v36 = vshll.u32 %v8403_v61, %v1650_v50  ;;  %v1957_v37 = vsel %vm1956_vm10, %v1955_v49, 0  ;;  %v8491_v45 = vmov 2475754826  }
 0x283   : > { %v1654_v47 = vshrl.u32 %v8491_v45, %v6899_v59  ;;  %v8492_v30 = vmov 2131351028   ;;  %v1660_v34 = vshrl.u32 %v8403_v61, %v6899_v59  ;;  %v1665_v56 = vshll.u32 %v8405_v55, %v1650_v50 }
 0x284   : > { %v1657_v54 = vshrl.u32 %v8492_v30, %v6899_v59  ;;  %v1512_v19 = vsub.f32 %v6781_v26, %v6810_v43  ;;  %v6921_v58 = vshrl.u32 %v1800_v21, 30  ;;  %v8493_v40 = vmov 683565275  }
 0x285   : > { %v1653_v62 = vshll.u32 %v8493_v40, %v1650_v50  ;;  %v1664_v60 = vor.u32 %v1663_v16, %v1662_v36  ;;  %v1656_v49 = vshll.u32 %v8491_v45, %v1650_v50  ;;  %v1659_v23 = vshll.u32 %v8492_v30, %v1650_v50 }
 0x286   : > { %v1667_v57 = vor.u32 %v1666_v44, %v1665_v56  ;;  %v1959_v52 = vand.u32 31, %v1957_v37  ;;  %6345 = vpow2.f32 %v1586_v32  ;;  %v6926_v3 = vmul.f32 2.0, %v1513_v38 }
 0x287   : > { %v8495_v61 = vand.u32 2147483647, %v6824_v63  ;;  %v6930_v1 = vmul.f32 2.0, %v1542_v18  ;;  %v6932_v43 = vor.u32 %v1654_v47, %v1653_v62  ;;  %v6934_v21 = vor.u32 %v1657_v54, %v1656_v49 }
 0x288   : > { %8494 = vst [vmem:[#allocation24_spill] sm:$0xff] %v6926_v3  ;;  %v1661_v2 = vor.u32 %v1660_v34, %v1659_v23  ;;  %vm1671_vm11 = vcmp.lt.s32.totalorder %v6909_v29, 4  ;;  %6347 = vpow2.f32 %v1584_v33  ;;  %v6937_v16 = vmul.f32 2.0, %v1512_v19 }
 0x289   : > { %v1643_v55 = vand.u32 8388607, %v8495_v61  ;;  %8496 = vst [vmem:[#allocation25_spill] sm:$0xff] %v6930_v1  ;;  %v1802_v50 = vshll.u32 %v6921_v58, 30  ;;  %v1677_v32 = vsel %vm1671_vm11, %v1664_v60, 920167782  ;;  %6349 = vpow2.f32 %v1580_v31 }
 0x28a   : > { %8497 = vst [vmem:[#allocation26_spill] sm:$0xff] %v6937_v16  ;;  %v1681_v61 = vsel %vm1671_vm11, %v1667_v57, 1326507024  ;;  %v6944_v38 = vsub.s32 32, %v1959_v52  ;;  %vm1668_vm12 = vcmp.lt.s32.totalorder %v6909_v29, 1  ;;  %vm1670_vm13 = vcmp.lt.s32.totalorder %v6909_v29, 3 }
 0x28b   : > { %v1644_v44 = vor.u32 8388608, %v1643_v55  ;;  %v1845_v33 = vand.u32 2139095040, %v6930_v1  ;;  %v1515_v36 = vsub.f32 %v6779_v25, %v6803_v35  ;;  %v1676_v31 = vsel %vm1668_vm12, %v6932_v43, %v6934_v21 }
 0x28c   : > { %v1678_v57 = vsel %vm1670_vm13, %v1661_v2, %v1677_v32  ;;  %v6959_v47 = vsub.s32 %v1799_v20, %v1802_v50  ;;  %v1680_v54 = vsel %vm1668_vm12, %v6934_v21, %v1661_v2  ;;  %v1682_v34 = vsel %vm1670_vm13, %v1664_v60, %v1681_v61 }
 0x28d   : > { %vm1669_vm14 = vcmp.lt.s32.totalorder %v6909_v29, 2  ;;  %v8498_v56 = vmov 920167782   ;;  %v1597_v62 = vmul.f32 2.0, %v6887_v48  ;;  %v6973_v23 = vshll.u32 %v1644_v44, 8 }
 0x28e   : > { %v1972_v19 = vshrl.u32 %v8498_v56, %v6944_v38  ;;  %v6344_v49 = vpop.eup %6343  ;;  %v1679_v20 = vsel %vm1669_vm14, %v1676_v31, %v1678_v57  ;;  %v8499_v50 = vmov 1326507024   ;;  %v1846_v55 = vshrl.u32 %v1845_v33, 23 }
 0x28f   : > { %v1975_v32 = vshrl.u32 %v8499_v50, %v6944_v38  ;;  %v1683_v60 = vsel %vm1669_vm14, %v1680_v54, %v1682_v34  ;;  %v6979_v61 = vshrl.u32 %v1957_v37, 5  ;;  %v1963_v18 = vshrl.u32 %v8491_v45, %v6944_v38 }
 0x290   : > { %v8500_v35 = vmov 2102212464   ;;  %v1805_v15 = vsub.s32 0, %v6959_v47  ;;  %v1966_v44 = vshrl.u32 %v8492_v30, %v6944_v38  ;;  %v1974_v33 = vshll.u32 %v8498_v56, %v1959_v52 }
 0x291   : > { %v1971_v48 = vshll.u32 %v8500_v35, %v1959_v52  ;;  %v1969_v31 = vshrl.u32 %v8500_v35, %v6944_v38  ;;  %v6991_v57 = vmul.u32.u64.low %v6973_v23, %v1679_v20  ;;  %v6992_v54 = vmul.u32.u64.high %v6973_v23, %v1679_v20, %v6991_v57 }
 0x292   : > { %v1962_v37 = vshll.u32 %v8493_v40, %v1959_v52  ;;  %v1965_v0 = vshll.u32 %v8491_v45, %v1959_v52  ;;  %v1968_v13 = vshll.u32 %v8492_v30, %v1959_v52  ;;  %v1976_v14 = vor.u32 %v1975_v32, %v1974_v33 }
 0x293   : > { %8501 = vst [vmem:[#allocation27_spill] sm:$0xff] %v6991_v57  ;;  %v1973_v34 = vor.u32 %v1972_v19, %v1971_v48  ;;  %v1623_v7 = vmul.f32 %v6344_v49, %v1597_v62  ;;  %v6998_v11 = vpop.eup %6345  ;;  %v7001_v6 = vmul.u32.u64.low %v6973_v23, %v1683_v60  ;;  %v7002_v5 = vmul.u32.u64.high %v6973_v23, %v1683_v60, %v7001_v6 }
 0x294   : > { %v8503_v12 = vand.u32 2147483647, %v6857_v41  ;;  %v7006_v10 = vor.u32 %v1963_v18, %v1962_v37  ;;  %v5573_v19 = vmin.u32 %v1805_v15, %v6959_v47  ;;  %v7009_v48 = vor.u32 %v1966_v44, %v1965_v0 }
 0x295   : > { %8502 = vst [vmem:[#allocation28_spill] sm:$0xff] %v7002_v5  ;;  %v1970_v28 = vor.u32 %v1969_v31, %v1968_v13  ;;  %vm1980_vm15 = vcmp.lt.s32.totalorder %v6979_v61, 4  ;;  %2470 = vrot.lane.b32.xlu1 %v1623_v7, %s6462_s28  ;;  %v7013_v52 = vpop.eup %6347  ;;  %v7015_v62 = vmul.f32 2.0, %v1515_v36  ;;  %v1652_v6 = vshrl.u32 %v8493_v40, %v6899_v59 }
 0x296   : > { %v1952_v20 = vand.u32 8388607, %v8503_v12  ;;  %v1673_v12 = vsel %vm1671_vm11, %v1661_v2, 2102212464  ;;  %v1986_v15 = vsel %vm1980_vm15, %v1973_v34, 920167782  ;;  %v7023_v0 = vpop.eup %6349  ;;  %v1514_v13 = vsub.f32 %v6783_v27, %v6812_v46 }
 0x297   : > { %8504 = vst [vmem:[#allocation29_spill] sm:$0xff] %v7015_v62  ;;  %v1990_v7 = vsel %vm1980_vm15, %v1976_v14, 1326507024  ;;  %v5576_v18 = vadd.s32 4294967169, %v1846_v55  ;;  %v1545_v36 = vadd.f32 %v6777_v24, %v1527_v22  ;;  %v1672_v59 = vsel %vm1668_vm12, %v1652_v6, %v6932_v43 }
 0x298   : > { %v1953_v49 = vor.u32 8388608, %v1952_v20  ;;  %vm1977_vm0 = vcmp.lt.s32.totalorder %v6979_v61, 1  ;;  %vm1979_vm1 = vcmp.lt.s32.totalorder %v6979_v61, 3  ;;  %v1807_v2 = vclz %v5573_v19 }
 0x299   : > { %v1674_v46 = vsel %vm1670_vm13, %v6934_v21, %v1673_v12  ;;  %v1985_v14 = vsel %vm1977_vm0, %v7006_v10, %v7009_v48  ;;  %v1987_v24 = vsel %vm1979_vm1, %v1970_v28, %v1986_v15  ;;  %v8505_v22 = vand.u32 2147483647, %v6926_v3 }
 0x29a   : > { %v1571_v55 = vand.u32 2147483647, %v7015_v62  ;;  %v1989_v32 = vsel %vm1977_vm0, %v7009_v48, %v1970_v28  ;;  %v1991_v21 = vsel %vm1979_vm1, %v1973_v34, %v1990_v7  ;;  %v8506_v60 = vand.u32 2147483647, %v6937_v16 }
 0x29b   : > { %v1577_v43 = vsub.f32 0.0, %v8505_v22  ;;  %v1694_v31 = vadd.s32 1, %v6992_v54  ;;  %vm1978_vm3 = vcmp.lt.s32.totalorder %v6979_v61, 2  ;;  %v1852_v33 = vadd.s32 1, %v5576_v18 }
 0x29c   : > { %v1576_v44 = vsub.f32 0.0, %v8506_v60  ;;  %v7056_v37 = vmul.f32 2.0, %v1514_v13  ;;  %v1675_v20 = vsel %vm1669_vm14, %v1672_v59, %v1674_v46  ;;  %vm1693_vm4 = vc.u32 %v7002_v5, %v6991_v57 }
 0x29d   : > { %v1988_v19 = vsel %vm1978_vm3, %v1985_v14, %v1987_v24  ;;  %v5574_v34 = vadd.s32 4294967294, %v1807_v2  ;;  %v1992_v6 = vsel %vm1978_vm3, %v1989_v32, %v1991_v21  ;;  %v1993_v12 = vshll.u32 %v1953_v49, 8 }
 0x29e   : > { %8507 = vst [vmem:[#allocation30_spill] sm:$0xff] %v7056_v37  ;;  %v7066_v15 = vmul.f32 2.0, %v1545_v36  ;;  %v1590_v7 = vmul.f32 1.442695, %v1577_v43  ;;  %v1579_v18 = vsub.f32 0.0, %v1571_v55  ;;  %v1695_v13 = vsel %vm1693_vm4, %v1694_v31, %v6992_v54  ;;  %v1525_v54 = vpop.permute.xlu0 %1524 }
 0x29f   : > { %v7069_v22 = vmul.u32.u64.low %v1993_v12, %v1988_v19  ;;  %v7070_v29 = vmul.u32.u64.high %v1993_v12, %v1988_v19, %v7069_v22  ;;  %vm1853_vm5 = vcmp.gt.s32.totalorder %v1852_v33, 0  ;;  %v1570_v59 = vand.u32 2147483647, %v7056_v37 }
 0x2a0   : > { %8508 = vst [vmem:[#allocation31_spill] sm:$0xff] %v7066_v15  ;;  %v1691_v46 = vmul.u32 %v6973_v23, %v1675_v20  ;;  %v7075_v2 = vmul.u32.u64.low %v1993_v12, %v1992_v6  ;;  %v7076_v14 = vmul.u32.u64.high %v1993_v12, %v1992_v6, %v7075_v2  ;;  %v1588_v24 = vmul.f32 1.442695, %v1576_v44 }
 0x2a1   : > { %8509 = vst [vmem:[#allocation32_spill] sm:$0xff] %v7069_v22  ;;  %vm5575_vm6 = vcmp.lt.s32.totalorder %v5574_v34, 0  ;;  %v2154_v36 = vand.u32 2139095040, %v7066_v15  ;;  %v1854_v43 = vsel %vm1853_vm5, %v1852_v33, 0  ;;  %6351 = vpow2.f32 %v1590_v7 }
 0x2a2   : > { %8510 = vst [vmem:[#allocation33_spill] sm:$0xff] %v7076_v14  ;;  %v7079_v49 = vadd.s32 %v1695_v13, %v1691_v46  ;;  %v1594_v55 = vmul.f32 1.442695, %v1579_v18  ;;  %v1982_v32 = vsel %vm1980_vm15, %v1970_v28, 2102212464  ;;  %v1578_v21 = vsub.f32 0.0, %v1570_v59 }
 0x2a3   : > { %v7083_v60 = vsel %vm5575_vm6, 0, %v5574_v34  ;;  %v1961_v23 = vshrl.u32 %v8493_v40, %v6944_v38  ;;  %6353 = vpow2.f32 %v1588_v24  ;;  %v1856_v44 = vand.u32 31, %v1854_v43 }
 0x2a4   : > { %v2155_v31 = vshrl.u32 %v2154_v36, 23  ;;  %v1544_v20 = vadd.f32 %v1525_v54, %v6781_v26  ;;  %v1697_v19 = vadd.s32 536870912, %v7079_v49  ;;  %v1983_v28 = vsel %vm1979_vm1, %v7009_v48, %v1982_v32 }
 0x2a5   : > { %v1981_v33 = vsel %vm1977_vm0, %v1961_v23, %v7006_v10  ;;  %6355 = vpow2.f32 %v1594_v55  ;;  %v1815_v34 = vsub.s32 4294967266, %v7083_v60  ;;  %v2003_v38 = vadd.s32 1, %v7070_v29 }
 0x2a6   : > { %v1592_v6 = vmul.f32 1.442695, %v1578_v21  ;;  %vm2002_vm7 = vc.u32 %v7076_v14, %v7069_v22  ;;  %v8433_v26 = vand.u32 2147483647, %v6930_v1  ;;  %v1984_v7 = vsel %vm1978_vm3, %v1981_v33, %v1983_v28 }
 0x2a7   : > { %v7102_v18 = vsub.s32 32, %v1856_v44  ;;  %v5588_v10 = vadd.s32 4294967169, %v2155_v31  ;;  %v7104_v13 = vmul.f32 2.0, %v1544_v20  ;;  %v7108_v48 = vmul.f32 %v6998_v11, %v6998_v11 }
 0x2a8   : > { %v7110_v59 = vshrl.u32 %v1697_v19, 30  ;;  %v7114_v46 = vmul.f32 %v7013_v52, %v7013_v52  ;;  %v1816_v2 = vadd.s32 127, %v1815_v34  ;;  %v2004_v24 = vsel %vm2002_vm7, %v2003_v38, %v7070_v29 }
 0x2a9   : > { %8511 = vst [vmem:[#allocation34_spill] sm:$0xff] %v7104_v13  ;;  %v7118_v61 = vmul.f32 2.0, %v6998_v11  ;;  %v7122_v36 = vmul.f32 %v7023_v0, %v7023_v0  ;;  %6357 = vpow2.f32 %v1592_v6  ;;  %v2000_v54 = vmul.u32 %v1993_v12, %v1984_v7 }
 0x2aa   : > { %8512 = vst [vmem:[#allocation35_spill] sm:$0xff] %v7110_v59  ;;  %v7126_v55 = vand.u32 8388607, %v8433_v26  ;;  %v1795_v32 = vadd.s32 %v6859_v42, %v6864_v53  ;;  %v1869_v21 = vshrl.u32 %v8498_v56, %v7102_v18  ;;  %v2161_v29 = vadd.s32 1, %v5588_v10 }
 0x2ab   : > { %v2051_v11 = vand.u32 2139095040, %v7104_v13  ;;  %v1811_v23 = vsub.s32 32, %v7083_v60  ;;  %v1699_v31 = vshll.u32 %v7110_v59, 30  ;;  %v7135_v20 = vadd.s32 %v2004_v24, %v2000_v54  ;;  %v1531_v54 = vpop.permute.xlu1 %1530 }
 0x2ac   : > { %v1872_v12 = vshrl.u32 %v8499_v50, %v7102_v18  ;;  %v1817_v19 = vshll.u32 %v1816_v2, 23  ;;  %v1860_v33 = vshrl.u32 %v8491_v45, %v7102_v18  ;;  %v1863_v42 = vshrl.u32 %v8492_v30, %v7102_v18 }
 0x2ad   : > { %v1868_v53 = vshll.u32 %v8500_v35, %v1856_v44  ;;  %v7146_v34 = vshrl.u32 %v1854_v43, 5  ;;  %v1859_v38 = vshll.u32 %v8493_v40, %v1856_v44  ;;  %v1866_v6 = vshrl.u32 %v8500_v35, %v7102_v18 }
 0x2ae   : > { %v7144_v28 = vpop.eup %6351  ;;  %v1871_v7 = vshll.u32 %v8498_v56, %v1856_v44  ;;  %v1862_v10 = vshll.u32 %v8491_v45, %v1856_v44  ;;  %vm2162_vm8 = vcmp.gt.s32.totalorder %v2161_v29, 0  ;;  %v2052_v24 = vshrl.u32 %v2051_v11, 23 }
 0x2af   : > { %v1870_v2 = vor.u32 %v1869_v21, %v1868_v53  ;;  %v1813_v62 = vshrl.u32 %v1795_v32, %v1811_v23  ;;  %v2006_v37 = vadd.s32 536870912, %v7135_v20  ;;  %v1865_v43 = vshll.u32 %v8492_v30, %v1856_v44 }
 0x2b0   : > { %v7153_v26 = vpop.eup %6353  ;;  %v1873_v3 = vor.u32 %v1872_v12, %v1871_v7  ;;  %v7159_v16 = vmul.f32 %v7144_v28, %v7144_v28  ;;  %v1812_v4 = vshll.u32 %v6959_v47, %v7083_v60  ;;  %v1861_v9 = vor.u32 %v1860_v33, %v1859_v38 }
 0x2b1   : > { %v1864_v21 = vor.u32 %v1863_v42, %v1862_v10  ;;  %v1867_v11 = vor.u32 %v1866_v6, %v1865_v43  ;;  %vm1877_vm9 = vcmp.lt.s32.totalorder %v7146_v34, 4  ;;  %v2163_v32 = vsel %vm2162_vm8, %v2161_v29, 0 }
 0x2b2   : > { %v7163_v53 = vpop.eup %6355  ;;  %v1547_v23 = vadd.f32 %v6779_v25, %v1531_v54  ;;  %v7169_v44 = vmul.f32 %v7153_v26, %v7153_v26  ;;  %v1818_v12 = vor.u32 4788187, %v1817_v19  ;;  %v1883_v7 = vsel %vm1877_vm9, %v1870_v2, 920167782  ;;  %v1529_v54 = vpop.permute.xlu0 %1528 }
 0x2b3   : > { %v5584_v8 = vadd.s32 4294967169, %v2052_v24  ;;  %v1814_v47 = vor.u32 %v1813_v62, %v1812_v4  ;;  %v7174_v60 = vsub.s32 %v7079_v49, %v1699_v31  ;;  %v7176_v33 = vshrl.u32 %v2006_v37, 30 }
 0x2b4   : > { %v1887_v29 = vsel %vm1877_vm9, %v1873_v3, 1326507024  ;;  %v7182_v25 = vmul.f32 %v7163_v53, %v7163_v53  ;;  %vm1874_vm10 = vcmp.lt.s32.totalorder %v7146_v34, 1  ;;  %vm1876_vm11 = vcmp.lt.s32.totalorder %v7146_v34, 3 }
 0x2b5   : > { %8513 = vst [vmem:[#allocation36_spill] sm:$0xff] %v7174_v60  ;;  %8514 = vst [vmem:[#allocation37_spill] sm:$0xff] %v7176_v33  ;;  %v2165_v19 = vand.u32 31, %v2163_v32  ;;  %v1850_v42 = vor.u32 8388608, %v7126_v55  ;;  %v1882_v4 = vsel %vm1874_vm10, %v1861_v9, %v1864_v21  ;;  %v1884_v62 = vsel %vm1876_vm11, %v1867_v11, %v1883_v7 }
 0x2b6   : > { %v7191_v37 = vmul.f32 2.0, %v1547_v23  ;;  %v7193_v3 = vpop.eup %6357  ;;  %v1819_v49 = vand.u32 2147483647, %v1818_v12  ;;  %v1886_v31 = vsel %vm1874_vm10, %v1864_v21, %v1867_v11  ;;  %v1888_v38 = vsel %vm1876_vm11, %v1870_v2, %v1887_v29 }
 0x2b7   : > { %8515 = vst [vmem:[#allocation38_spill] sm:$0xff] %v7193_v3  ;;  %v2058_v6 = vadd.s32 1, %v5584_v8  ;;  %v1821_v10 = vcvt.s32.f32 %v1814_v47  ;;  %v1702_v55 = vsub.s32 0, %v7174_v60  ;;  %v2008_v24 = vshll.u32 %v7176_v33, 30 }
 0x2b8   : > { %vm1875_vm12 = vcmp.lt.s32.totalorder %v7146_v34, 2  ;;  %v1858_v43 = vshrl.u32 %v8493_v40, %v7102_v18  ;;  %v1879_v23 = vsel %vm1877_vm9, %v1867_v11, 2102212464  ;;  %v7208_v7 = vsub.s32 32, %v2165_v19 }
 0x2b9   : > { %v1885_v12 = vsel %vm1875_vm12, %v1882_v4, %v1884_v62  ;;  %v1889_v8 = vsel %vm1875_vm12, %v1886_v31, %v1888_v38  ;;  %v7212_v2 = vshll.u32 %v1850_v42, 8  ;;  %v8445_v47 = vand.u32 2147483647, %v7066_v15 }
 0x2ba   : > { %v2360_v29 = vand.u32 2139095040, %v7191_v37  ;;  %v7216_v51 = vmul.f32 %v1821_v10, %v1819_v49  ;;  %v1878_v18 = vsel %vm1874_vm10, %v1858_v43, %v1861_v9  ;;  %vm2059_vm13 = vcmp.gt.s32.totalorder %v2058_v6, 0 }
 0x2bb   : > { %v1546_v11 = vadd.f32 %v1529_v54, %v6783_v27  ;;  %v7222_v4 = vsub.s32 %v7135_v20, %v2008_v24  ;;  %v1880_v62 = vsel %vm1876_vm11, %v1864_v21, %v1879_v23  ;;  %v2181_v9 = vshrl.u32 %v8499_v50, %v7208_v7 }
 0x2bc   : > { %v7227_v42 = vmul.u32.u64.low %v7212_v2, %v1885_v12  ;;  %v7228_v31 = vmul.u32.u64.high %v7212_v2, %v1885_v12, %v7227_v42  ;;  %v7232_v49 = vmul.u32.u64.low %v7212_v2, %v1889_v8  ;;  %v7233_v38 = vmul.u32.u64.high %v7212_v2, %v1889_v8, %v7232_v49 }
 0x2bd   : > { %8516 = vst [vmem:[#allocation39_spill] sm:$0xff] %v7222_v4  ;;  %v1615_v27 = vadd.f32 1.0, %v7108_v48  ;;  %v2158_v20 = vand.u32 8388607, %v8445_v47  ;;  %v2178_v21 = vshrl.u32 %v8498_v56, %v7208_v7  ;;  %v2060_v10 = vsel %vm2059_vm13, %v2058_v6, 0 }
 0x2be   : > { %v2361_v24 = vshrl.u32 %v2360_v29, 23  ;;  %v7242_v54 = vshrl.u32 %v2163_v32, 5  ;;  %v2180_v43 = vshll.u32 %v8498_v56, %v2165_v19  ;;  %v7245_v23 = vmul.f32 2.0, %v1546_v11 }
 0x2bf   : > { %v1612_v12 = vadd.f32 1.0, %v7122_v36  ;;  %v2171_v8 = vshll.u32 %v8491_v45, %v2165_v19  ;;  %v2172_v48 = vshrl.u32 %v8492_v30, %v7208_v7  ;;  %v2175_v49 = vshrl.u32 %v8500_v35, %v7208_v7 }
 0x2c0   : > { %v2177_v47 = vshll.u32 %v8500_v35, %v2165_v19  ;;  %v2169_v32 = vshrl.u32 %v8491_v45, %v7208_v7  ;;  %v2182_v6 = vor.u32 %v2181_v9, %v2180_v43  ;;  %v2062_v29 = vand.u32 31, %v2060_v10 }
 0x2c1   : > { %6359 = vrcp.f32 %v1615_v27  ;;  %v2174_v11 = vshll.u32 %v8492_v30, %v2165_v19  ;;  %v5596_v36 = vadd.s32 4294967169, %v2361_v24  ;;  %v7259_v15 = vmul.f32 %v7193_v3, %v7193_v3 }
 0x2c2   : > { %v2179_v17 = vor.u32 %v2178_v21, %v2177_v47  ;;  %6361 = vrcp.f32 %v1612_v12  ;;  %v7262_v1 = vmin.u32 %v1702_v55, %v7174_v60  ;;  %v2011_v59 = vsub.s32 0, %v7222_v4 }
 0x2c3   : > { %v2168_v33 = vshll.u32 %v8493_v40, %v2165_v19  ;;  %v7268_v9 = vsel %vm1875_vm12, %v1878_v18, %v1880_v62  ;;  %v7270_v27 = vor.u32 %v2172_v48, %v2171_v8  ;;  %v2176_v47 = vor.u32 %v2175_v49, %v2174_v11 }
 0x2c4   : > { %vm2186_vm14 = vcmp.lt.s32.totalorder %v7242_v54, 4  ;;  %v7278_v43 = vsub.s32 32, %v2062_v29  ;;  %v2159_v12 = vor.u32 8388608, %v2158_v20  ;;  %v2367_v19 = vadd.s32 1, %v5596_v36 }
 0x2c5   : > { %v7274_v24 = vor.u32 %v2169_v32, %v2168_v33  ;;  %v2196_v55 = vsel %vm2186_vm14, %v2182_v6, 1326507024  ;;  %v2192_v34 = vsel %vm2186_vm14, %v2179_v17, 920167782  ;;  %v2257_v18 = vand.u32 2139095040, %v7245_v23 }
 0x2c6   : > { %v7284_v62 = vmin.u32 %v2011_v59, %v7222_v4  ;;  %vm2183_vm15 = vcmp.lt.s32.totalorder %v7242_v54, 1  ;;  %vm2185_vm0 = vcmp.lt.s32.totalorder %v7242_v54, 3  ;;  %v1900_v33 = vadd.s32 1, %v7228_v31 }
 0x2c7   : > { %v2195_v20 = vsel %vm2183_vm15, %v7270_v27, %v2176_v47  ;;  %v2197_v48 = vsel %vm2185_vm0, %v2179_v17, %v2196_v55  ;;  %vm1899_vm1 = vc.u32 %v7233_v38, %v7227_v42  ;;  %v2191_v59 = vsel %vm2183_vm15, %v7274_v24, %v7270_v27 }
 0x2c8   : > { %v2193_v32 = vsel %vm2185_vm0, %v2176_v47, %v2192_v34  ;;  %v2075_v6 = vshrl.u32 %v8498_v56, %v7278_v43  ;;  %vm2184_vm3 = vcmp.lt.s32.totalorder %v7242_v54, 2  ;;  %v7308_v11 = vshll.u32 %v2159_v12, 8 }
 0x2c9   : > { %vm2368_vm4 = vcmp.gt.s32.totalorder %v2367_v19, 0  ;;  %v2258_v17 = vshrl.u32 %v2257_v18, 23  ;;  %v2198_v36 = vsel %vm2184_vm3, %v2195_v20, %v2197_v48  ;;  %v2066_v55 = vshrl.u32 %v8491_v45, %v7278_v43 }
 0x2ca   : > { %v2069_v8 = vshrl.u32 %v8492_v30, %v7278_v43  ;;  %v2074_v34 = vshll.u32 %v8500_v35, %v2062_v29  ;;  %v2194_v21 = vsel %vm2184_vm3, %v2191_v59, %v2193_v32  ;;  %v7319_v49 = vshrl.u32 %v2060_v10, 5 }
 0x2cb   : > { %v2065_v12 = vshll.u32 %v8493_v40, %v2062_v29  ;;  %v2072_v18 = vshrl.u32 %v8500_v35, %v7278_v43  ;;  %vm1741_vm5 = vcmp.lt.s32.totalorder %v6805_v39, 0  ;;  %v2068_v20 = vshll.u32 %v8491_v45, %v2062_v29 }
 0x2cc   : > { %v2076_v48 = vor.u32 %v2075_v6, %v2074_v34  ;;  %v2078_v63 = vshrl.u32 %v8499_v50, %v7278_v43  ;;  %v2369_v41 = vsel %vm2368_vm4, %v2367_v19, 0  ;;  %v2071_v10 = vshll.u32 %v8492_v30, %v2062_v29 }
 0x2cd   : > { %v7329_v4 = vmul.u32.u64.low %v7308_v11, %v2198_v36  ;;  %v7330_v59 = vmul.u32.u64.high %v7308_v11, %v2198_v36, %v7329_v4  ;;  %v5592_v32 = vadd.s32 4294967169, %v2258_v17  ;;  %v8517_v5 = vand.u32 2147483647, %v7104_v13 }
 0x2ce   : > { %v6360_v60 = vpop.eup %6359  ;;  %v7335_v14 = vor.u32 %v2066_v55, %v2065_v12  ;;  %v7337_v3 = vor.u32 %v2069_v8, %v2068_v20  ;;  %v2077_v6 = vshll.u32 %v8498_v56, %v2062_v29  ;;  %v7340_v34 = vor.u32 %v2072_v18, %v2071_v10 }
 0x2cf   : > { %v6362_v57 = vpop.eup %6361  ;;  %v2055_v22 = vand.u32 8388607, %v8517_v5  ;;  %vm2083_vm6 = vcmp.lt.s32.totalorder %v7319_v49, 4  ;;  %v2371_v19 = vand.u32 31, %v2369_v41  ;;  %v1596_v4 = vmul.f32 2.0, %v7023_v0 }
 0x2d0   : > { %v7345_v36 = vmul.u32.u64.low %v7308_v11, %v2194_v21  ;;  %v7346_v17 = vmul.u32.u64.high %v7308_v11, %v2194_v21, %v7345_v36  ;;  %v2079_v13 = vor.u32 %v2078_v63, %v2077_v6  ;;  %v2089_v5 = vsel %vm2083_vm6, %v2076_v48, 920167782 }
 0x2d1   : > { %v2188_v8 = vsel %vm2186_vm14, %v2176_v47, 2102212464  ;;  %v2264_v29 = vadd.s32 1, %v5592_v32  ;;  %v1627_v55 = vmul.f32 %v6360_v60, %v7118_v61  ;;  %v1621_v12 = vmul.f32 %v6362_v57, %v1596_v4 }
 0x2d2   : > { %v2167_v18 = vshrl.u32 %v8493_v40, %v7208_v7  ;;  %v2056_v0 = vor.u32 8388608, %v2055_v22  ;;  %vm2080_vm7 = vcmp.lt.s32.totalorder %v7319_v49, 1  ;;  %vm2082_vm8 = vcmp.lt.s32.totalorder %v7319_v49, 3 }
 0x2d3   : > { %v1901_v63 = vsel %vm1899_vm1, %v1900_v33, %v7228_v31  ;;  %v2088_v47 = vsel %vm2080_vm7, %v7335_v14, %v7337_v3  ;;  %v2090_v57 = vsel %vm2082_vm8, %v7340_v34, %v2089_v5  ;;  %v7369_v61 = vsub.s32 32, %v2371_v19  ;;  %2474 = vrot.lane.b32.xlu1 %v1627_v55, %s6462_s28  ;;  %2468 = vrot.lane.b32.xlu0 %v1621_v12, %s6462_s28 }
 0x2d4   : > { %v2187_v22 = vsel %vm2183_vm15, %v2167_v18, %v7274_v24  ;;  %v2189_v60 = vsel %vm2185_vm0, %v7270_v27, %v2188_v8  ;;  %v2093_v7 = vsel %vm2083_vm6, %v2079_v13, 1326507024  ;;  %v8468_v31 = vand.u32 2147483647, %v7191_v37 }
 0x2d5   : > { %v8518_v21 = vxor.u32 2147483648, %v7216_v51  ;;  %v1704_v20 = vclz %v7262_v1  ;;  %vm2081_vm9 = vcmp.lt.s32.totalorder %v7319_v49, 2  ;;  %vm2265_vm10 = vcmp.gt.s32.totalorder %v2264_v29, 0 }
 0x2d6   : > { %v8519_v27 = vmul.u32 %v7212_v2, %v7268_v9  ;;  %v7399_v10 = vsel %vm2081_vm9, %v2088_v47, %v2090_v57  ;;  %v7401_v32 = vshll.u32 %v2056_v0, 8  ;;  %v2092_v6 = vsel %vm2080_vm7, %v7337_v3, %v7340_v34 }
 0x2d7   : > { %v7387_v33 = vsel %vm1741_vm5, %v8518_v21, %v7216_v51  ;;  %v7405_v51 = vsel %vm2184_vm3, %v2187_v22, %v2189_v60  ;;  %v2094_v2 = vsel %vm2082_vm8, %v2076_v48, %v2093_v7  ;;  %v2387_v9 = vshrl.u32 %v8499_v50, %v7369_v61 }
 0x2d8   : > { %v7395_v13 = vadd.s32 %v1901_v63, %v8519_v27  ;;  %vm2208_vm11 = vc.u32 %v7330_v59, %v7345_v36  ;;  %v2209_v4 = vadd.s32 1, %v7346_v17  ;;  %v7420_v54 = vand.u32 8388607, %v8468_v31 }
 0x2d9   : > { %v2266_v5 = vsel %vm2265_vm10, %v2264_v29, 0  ;;  %v7424_v8 = vmul.u32.u64.low %v7401_v32, %v7399_v10  ;;  %v7425_v55 = vmul.u32.u64.high %v7401_v32, %v7399_v10, %v7424_v8  ;;  %v2384_v48 = vshrl.u32 %v8498_v56, %v7369_v61 }
 0x2da   : > { %v2386_v12 = vshll.u32 %v8498_v56, %v2371_v19  ;;  %v7433_v18 = vsel %vm2081_vm9, %v2092_v6, %v2094_v2  ;;  %v7435_v0 = vshrl.u32 %v2369_v41, 5  ;;  %v2378_v29 = vshrl.u32 %v8492_v30, %v7369_v61 }
 0x2db   : > { %v2381_v63 = vshrl.u32 %v8500_v35, %v7369_v61  ;;  %v2383_v47 = vshll.u32 %v8500_v35, %v2371_v19  ;;  %v2254_v22 = vand.u32 2147483647, %v7245_v23  ;;  %v2268_v60 = vand.u32 31, %v2266_v5 }
 0x2dc   : > { %v2388_v57 = vor.u32 %v2387_v9, %v2386_v12  ;;  %v2375_v7 = vshrl.u32 %v8491_v45, %v7369_v61  ;;  %v2377_v21 = vshll.u32 %v8491_v45, %v2371_v19  ;;  %v2380_v41 = vshll.u32 %v8492_v30, %v2371_v19 }
 0x2dd   : > { %v1614_v27 = vadd.f32 1.0, %v7114_v46  ;;  %v7452_v6 = vmul.u32.u64.low %v7401_v32, %v7433_v18  ;;  %v7453_v2 = vmul.u32.u64.high %v7401_v32, %v7433_v18, %v7452_v6  ;;  %v2385_v9 = vor.u32 %v2384_v48, %v2383_v47 }
 0x2de   : > { %v2374_v12 = vshll.u32 %v8493_v40, %v2371_v19  ;;  %v7457_v31 = vor.u32 %v2378_v29, %v2377_v21  ;;  %v7459_v24 = vor.u32 %v2381_v63, %v2380_v41  ;;  %vm2392_vm12 = vcmp.lt.s32.totalorder %v7435_v0, 4 }
 0x2df   : > { %v7466_v46 = vsel %vm2208_vm11, %v2209_v4, %v7346_v17  ;;  %v2365_v10 = vor.u32 8388608, %v7420_v54  ;;  %v2402_v18 = vsel %vm2392_vm12, %v2388_v57, 1326507024  ;;  %v7471_v48 = vsub.s32 32, %v2268_v60 }
 0x2e0   : > { %v7473_v19 = vor.u32 %v2375_v7, %v2374_v12  ;;  %vm2389_vm13 = vcmp.lt.s32.totalorder %v7435_v0, 1  ;;  %v7478_v29 = vand.u32 8388607, %v2254_v22  ;;  %6363 = vrcp.f32 %v1614_v27 }
 0x2e1   : > { %vm2390_vm14 = vcmp.lt.s32.totalorder %v7435_v0, 2  ;;  %vm2391_vm15 = vcmp.lt.s32.totalorder %v7435_v0, 3  ;;  %v2398_v17 = vsel %vm2392_vm12, %v2385_v9, 920167782  ;;  %v1617_v4 = vadd.f32 1.0, %v7159_v16 }
 0x2e2   : > { %v2401_v54 = vsel %vm2389_vm13, %v7457_v31, %v7459_v24  ;;  %v2403_v63 = vsel %vm2391_vm15, %v2385_v9, %v2402_v18  ;;  %v7491_v47 = vshrl.u32 %v2266_v5, 5  ;;  %v1616_v57 = vadd.f32 1.0, %v7169_v44 }
 0x2e3   : > { %v2272_v7 = vshrl.u32 %v8491_v45, %v7471_v48  ;;  %v2281_v21 = vshrl.u32 %v8498_v56, %v7471_v48  ;;  %6365 = vrcp.f32 %v1617_v4  ;;  %v1619_v16 = vadd.f32 1.0, %v7182_v25 }
 0x2e4   : > { %v2275_v41 = vshrl.u32 %v8492_v30, %v7471_v48  ;;  %v2284_v27 = vshrl.u32 %v8499_v50, %v7471_v48  ;;  %6367 = vrcp.f32 %v1616_v57  ;;  %v1618_v5 = vadd.f32 1.0, %v7259_v15 }
 0x2e5   : > { %v2280_v44 = vshll.u32 %v8500_v35, %v2268_v60  ;;  %6369 = vrcp.f32 %v1619_v16  ;;  %v8520_v6 = vand.u32 2147483647, %v6805_v39  ;;  %v1825_v25 = vsub.s32 4, %v6921_v58 }
 0x2e6   : > { %v2278_v12 = vshrl.u32 %v8500_v35, %v7471_v48  ;;  %v2283_v18 = vshll.u32 %v8498_v56, %v2268_v60  ;;  %6371 = vrcp.f32 %v1618_v5  ;;  %v2271_v15 = vshll.u32 %v8493_v40, %v2268_v60 }
 0x2e7   : > { %vm7507_vm0 = vcmp.le.f32.partialorder %v8520_v6, 0.7853982  ;;  %v2274_v4 = vshll.u32 %v8491_v45, %v2268_v60  ;;  %v2282_v57 = vor.u32 %v2281_v21, %v2280_v44  ;;  %v2277_v16 = vshll.u32 %v8492_v30, %v2268_v60 }
 0x2e8   : > { %v1827_v50 = vsel %vm7507_vm0, %v6805_v39, %v7387_v33  ;;  %v2285_v6 = vor.u32 %v2284_v27, %v2283_v18  ;;  %v1826_v35 = vsel %vm1741_vm5, %v1825_v25, %v6921_v58  ;;  %v2064_v56 = vshrl.u32 %v8493_v40, %v7278_v43 }
 0x2e9   : > { %6373 = vcosq.f32 %v1827_v50  ;;  %v2397_v33 = vsel %vm2389_vm13, %v7473_v19, %v7457_v31  ;;  %v2399_v45 = vsel %vm2391_vm15, %v7459_v24, %v2398_v17  ;;  %v2404_v30 = vsel %vm2390_vm14, %v2401_v54, %v2403_v63 }
 0x2ea   : > { %6375 = vsinq.f32 %v1827_v50  ;;  %v7536_v60 = vor.u32 %v2272_v7, %v2271_v15  ;;  %v7538_v21 = vor.u32 %v2275_v41, %v2274_v4  ;;  %v7540_v58 = vor.u32 %v2278_v12, %v2277_v16 }
 0x2eb   : > { %vm2289_vm1 = vcmp.lt.s32.totalorder %v7491_v47, 4  ;;  %v2085_v43 = vsel %vm2083_vm6, %v7340_v34, 2102212464  ;;  %v7546_v27 = vshll.u32 %v2365_v10, 8  ;;  %v7552_v54 = vsel %vm7507_vm0, 0, %v1826_v35 }
 0x2ec   : > { %v2295_v17 = vsel %vm2289_vm1, %v2282_v57, 920167782  ;;  %v2400_v63 = vsel %vm2390_vm14, %v2397_v33, %v2399_v45  ;;  %v2262_v7 = vor.u32 8388608, %v7478_v29  ;;  %v2299_v41 = vsel %vm2289_vm1, %v2285_v6, 1326507024 }
 0x2ed   : > { %v1598_v5 = vmul.f32 2.0, %v7013_v52  ;;  %v6364_v34 = vpop.eup %6363  ;;  %v7561_v10 = vmul.u32.u64.low %v7546_v27, %v2404_v30  ;;  %v7562_v44 = vmul.u32.u64.high %v7546_v27, %v2404_v30, %v7561_v10  ;;  %vm2286_vm3 = vcmp.lt.s32.totalorder %v7491_v47, 1 }
 0x2ee   : > { %vm2288_vm4 = vcmp.lt.s32.totalorder %v7491_v47, 3  ;;  %v2294_v9 = vsel %vm2286_vm3, %v7536_v60, %v7538_v21  ;;  %v2761_v52 = vadd.s32 3, %v7552_v54  ;;  %v2106_v12 = vadd.s32 1, %v7425_v55 }
 0x2ef   : > { %v2296_v29 = vsel %vm2288_vm4, %v7540_v58, %v2295_v17  ;;  %v1625_v25 = vmul.f32 %v6364_v34, %v1598_v5  ;;  %v2298_v18 = vsel %vm2286_vm3, %v7538_v21, %v7540_v58  ;;  %v2300_v50 = vsel %vm2288_vm4, %v2282_v57, %v2299_v41  ;;  %v8523_v5 = vld [vmem:[#allocation38_spill] sm:$0xff] }
 0x2f0   : > { %v1601_v15 = vmul.f32 2.0, %v7144_v28  ;;  %v6366_v4 = vpop.eup %6365  ;;  %v7583_v16 = vmul.u32.u64.low %v7546_v27, %v2400_v63  ;;  %v7584_v6 = vmul.u32.u64.high %v7546_v27, %v2400_v63, %v7583_v16  ;;  %vm2287_vm5 = vcmp.lt.s32.totalorder %v7491_v47, 2 }
 0x2f1   : > { %2472 = vrot.lane.b32.xlu0 %v1625_v25, %s6462_s28  ;;  %v1600_v35 = vmul.f32 2.0, %v7153_v26  ;;  %v6368_v33 = vpop.eup %6367  ;;  %v2297_v45 = vsel %vm2287_vm5, %v2294_v9, %v2296_v29  ;;  %v7592_v30 = vshll.u32 %v2262_v7, 8  ;;  %v1603_v28 = vmul.f32 2.0, %v7163_v53 }
 0x2f2   : > { %v1631_v57 = vmul.f32 %v6366_v4, %v1601_v15  ;;  %v6370_v17 = vpop.eup %6369  ;;  %v2301_v63 = vsel %vm2287_vm5, %v2298_v18, %v2300_v50  ;;  %v1602_v34 = vmul.f32 2.0, %v8523_v5  ;;  %v2762_v10 = vand.u32 3, %v2761_v52 }
 0x2f3   : > { %v1629_v41 = vmul.f32 %v6368_v33, %v1600_v35  ;;  %v6372_v25 = vpop.eup %6371  ;;  %v2084_v26 = vsel %vm2080_vm7, %v2064_v56, %v7335_v14  ;;  %v2086_v7 = vsel %vm2082_vm8, %v7337_v3, %v2085_v43  ;;  %vm2105_vm6 = vc.u32 %v7453_v2, %v7424_v8 }
 0x2f4   : > { %2478 = vrot.lane.b32.xlu1 %v1631_v57, %s6462_s28  ;;  %v1635_v53 = vmul.f32 %v6370_v17, %v1603_v28  ;;  %v2394_v29 = vsel %vm2392_vm12, %v7459_v24, 2102212464  ;;  %v7611_v52 = vmul.u32.u64.low %v7592_v30, %v2297_v45  ;;  %v7612_v18 = vmul.u32.u64.high %v7592_v30, %v2297_v45, %v7611_v52 }
 0x2f5   : > { %2476 = vrot.lane.b32.xlu0 %v1629_v41, %s6462_s28  ;;  %v1633_v14 = vmul.f32 %v6372_v25, %v1602_v34  ;;  %v2373_v56 = vshrl.u32 %v8493_v40, %v7369_v61  ;;  %v7619_v43 = vmul.u32.u64.low %v7592_v30, %v2301_v63  ;;  %v7620_v50 = vmul.u32.u64.high %v7592_v30, %v2301_v63, %v7619_v43 }
 0x2f6   : > { %v6374_v9 = vpop.eup %6373  ;;  %v2087_v24 = vsel %vm2081_vm9, %v2084_v26, %v2086_v7  ;;  %v2107_v4 = vsel %vm2105_vm6, %v2106_v12, %v7425_v55  ;;  %vm2767_vm7 = vcmp.eq.s32.totalorder %v2762_v10, 2  ;;  %v2395_v61 = vsel %vm2391_vm15, %v7457_v31, %v2394_v29 }
 0x2f7   : > { %v6376_v3 = vpop.eup %6375  ;;  %v1838_v15 = vxor.u32 2147483648, %v6374_v9  ;;  %v2393_v33 = vsel %vm2389_vm13, %v2373_v56, %v7473_v19  ;;  %vm2764_vm8 = vcmp.eq.s32.totalorder %v2762_v10, 0  ;;  %v2415_v57 = vadd.s32 1, %v7584_v6 }
 0x2f8   : > { %v1835_v35 = vxor.u32 2147483648, %v6376_v3  ;;  %2482 = vrot.lane.b32.xlu1 %v1635_v53, %s6462_s28  ;;  %v2291_v49 = vsel %vm2289_vm1, %v7540_v58, 2102212464  ;;  %vm2763_vm9 = vcmp.lt.s32.totalorder %v2762_v10, 2  ;;  %v2270_v19 = vshrl.u32 %v8493_v40, %v7471_v48 }
 0x2f9   : > { %v2769_v45 = vsel %vm2767_vm7, %v1838_v15, %v6376_v3  ;;  %2480 = vrot.lane.b32.xlu0 %v1633_v14, %s6462_s28  ;;  %vm1831_vm10 = vweird.f32 %v6805_v39  ;;  %v1832_v31 = vand.u32 3, %v7552_v54  ;;  %v5570_v28 = vadd.s32 4294967294, %v1704_v20 }
 0x2fa   : > { %v2766_v55 = vsel %vm2764_vm8, %v6374_v9, %v1835_v35  ;;  %v2103_v17 = vmul.u32 %v7401_v32, %v2087_v24  ;;  %vm2414_vm11 = vc.u32 %v7562_v44, %v7583_v16  ;;  %v8524_v63 = vmul.u32 %v7308_v11, %v7405_v51 }
 0x2fb   : > { %v2770_v12 = vsel %vm2763_vm9, %v2766_v55, %v2769_v45  ;;  %v2396_v48 = vsel %vm2390_vm14, %v2393_v33, %v2395_v61  ;;  %v2290_v1 = vsel %vm2286_vm3, %v2270_v19, %v7536_v60  ;;  %v2292_v20 = vsel %vm2288_vm4, %v7538_v21, %v2291_v49 }
 0x2fc   : > { %v2771_v58 = vsel %vm1831_vm10, nan, %v2770_v12  ;;  %v2211_v40 = vadd.s32 %v7466_v46, %v8524_v63  ;;  %v8525_v32 = vclz %v7284_v62  ;;  %v1903_v41 = vadd.s32 536870912, %v7395_v13 }
 0x2fd   : > { %v2108_v5 = vadd.s32 %v2107_v4, %v2103_v17  ;;  %v2312_v11 = vadd.s32 1, %v7612_v18  ;;  %v2416_v51 = vsel %vm2414_vm11, %v2415_v57, %v7584_v6  ;;  %vm2311_vm12 = vc.u32 %v7620_v50, %v7611_v52 }
 0x2fe   : > { %v5582_v54 = vadd.s32 4294967294, %v8525_v32  ;;  %vm1834_vm13 = vcmp.eq.s32.totalorder %v1832_v31, 0  ;;  %vm1837_vm14 = vcmp.eq.s32.totalorder %v1832_v31, 2  ;;  %v2412_v0 = vmul.u32 %v7546_v27, %v2396_v48  ;;  %v8528_v32 = vld [vmem:[#allocation28_spill] sm:$0xff] }
 0x2ff   : > { %v2293_v46 = vsel %vm2287_vm5, %v2290_v1, %v2292_v20  ;;  %v1836_v60 = vsel %vm1834_vm13, %v6374_v9, %v1835_v35  ;;  %v1839_v62 = vsel %vm1837_vm14, %v1838_v15, %v6376_v3  ;;  %v2212_v21 = vadd.s32 536870912, %v2211_v40 }
 0x300   : > { %vm5583_vm15 = vcmp.lt.s32.totalorder %v5582_v54, 0  ;;  %v2417_v34 = vadd.s32 %v2416_v51, %v2412_v0  ;;  %v2313_v10 = vsel %vm2311_vm12, %v2312_v11, %v7612_v18  ;;  %vm1833_vm0 = vcmp.lt.s32.totalorder %v1832_v31, 2 }
 0x301   : > { %v7671_v25 = vshrl.u32 %v1903_v41, 30  ;;  %v2309_v6 = vmul.u32 %v7592_v30, %v2293_v46  ;;  %v1840_v26 = vsel %vm1833_vm0, %v1836_v60, %v1839_v62  ;;  %vm5571_vm1 = vcmp.lt.s32.totalorder %v5570_v28, 0  ;;  %v8530_v62 = vld [vmem:[#allocation39_spill] sm:$0xff] }
 0x302   : > { %v2109_v7 = vadd.s32 536870912, %v2108_v5  ;;  %v2016_v53 = vsel %vm5583_vm15, 0, %v5582_v54  ;;  %v7674_v27 = vshrl.u32 %v2212_v21, 30  ;;  %v2418_v29 = vadd.s32 536870912, %v2417_v34  ;;  %v8529_v54 = vld [vmem:[#allocation27_spill] sm:$0xff] }
 0x303   : > { %v2314_v47 = vadd.s32 %v2313_v10, %v2309_v6  ;;  %v1841_v9 = vsel %vm1831_vm10, nan, %v1840_v26  ;;  %v1707_v3 = vsel %vm5571_vm1, 0, %v5570_v28  ;;  %v1905_v18 = vshll.u32 %v7671_v25, 30 }
 0x304   : > { %v2021_v15 = vsub.s32 4294967266, %v2016_v53  ;;  %v7679_v24 = vshrl.u32 %v2109_v7, 30  ;;  %v2214_v30 = vshll.u32 %v7674_v27, 30  ;;  %v1712_v33 = vsub.s32 4294967266, %v1707_v3  ;;  %v8531_v7 = vld [vmem:[#allocation36_spill] sm:$0xff] }
 0x305   : > { %v2315_v4 = vadd.s32 536870912, %v2314_v47  ;;  %v7682_v61 = vshrl.u32 %v2418_v29, 30  ;;  %v7685_v45 = vsub.s32 %v7395_v13, %v1905_v18  ;;  %v2017_v31 = vsub.s32 32, %v2016_v53  ;;  %v8527_v13 = vld [vmem:[#allocation32_spill] sm:$0xff] }
 0x306   : > { %v2022_v39 = vadd.s32 127, %v2021_v15  ;;  %v2111_v57 = vshll.u32 %v7679_v24, 30  ;;  %v7689_v49 = vsub.s32 %v2211_v40, %v2214_v30  ;;  %v1713_v19 = vadd.s32 127, %v1712_v33 }
 0x307   : > { %v2471_v14 = vpop.permute.xlu1 %2470  ;;  %v7691_v55 = vshrl.u32 %v2315_v4, 30  ;;  %v2420_v12 = vshll.u32 %v7682_v61, 30  ;;  %v1908_v28 = vsub.s32 0, %v7685_v45  ;;  %v1708_v17 = vsub.s32 32, %v1707_v3 }
 0x308   : > { %v2493_v56 = vmul.f32 %v2471_v14, %v1841_v9  ;;  %v3397_v43 = vmul.f32 %v2771_v58, %v2471_v14  ;;  %v8526_v58 = vld [vmem:[#allocation33_spill] sm:$0xff]  ;;  %v2023_v48 = vshll.u32 %v2022_v39, 23  ;;  %v7697_v1 = vsub.s32 %v2108_v5, %v2111_v57 }
 0x309   : > { %v2001_v63 = vadd.s32 %v8527_v13, %v8526_v58  ;;  %v2217_v20 = vsub.s32 0, %v7689_v49  ;;  %v2317_v40 = vshll.u32 %v7691_v55, 30  ;;  %v1692_v41 = vadd.s32 %v8529_v54, %v8528_v32  ;;  %v8532_v54 = vld [vmem:[#allocation20_spill] sm:$0xff] }
 0x30a   : > { %v2501_v35 = vadd.f32 1.0, %v2493_v56  ;;  %v1714_v11 = vshll.u32 %v1713_v19, 23  ;;  %v7703_v0 = vsub.s32 %v2417_v34, %v2420_v12  ;;  %v5577_v46 = vmin.u32 %v1908_v28, %v7685_v45 }
 0x30b   : > { %v2019_v51 = vshrl.u32 %v2001_v63, %v2017_v31  ;;  %v1710_v60 = vshrl.u32 %v1692_v41, %v1708_v17  ;;  %v2018_v21 = vshll.u32 %v8530_v62, %v2016_v53  ;;  %v2024_v10 = vor.u32 4788187, %v2023_v48 }
 0x30c   : > { %6377 = vrcp.f32 %v2501_v35  ;;  %2526 = vrot.lane.b32.xlu1 %v2501_v35, %s6461_s27  ;;  %v2114_v5 = vsub.s32 0, %v7697_v1  ;;  %v5589_v6 = vmin.u32 %v2217_v20, %v7689_v49  ;;  %v7709_v26 = vsub.s32 %v2314_v47, %v2317_v40 }
 0x30d   : > { %v1709_v29 = vshll.u32 %v8531_v7, %v1707_v3  ;;  %v1715_v9 = vor.u32 4788187, %v1714_v11  ;;  %v2020_v14 = vor.u32 %v2019_v51, %v2018_v21  ;;  %v2423_v18 = vsub.s32 0, %v7703_v0  ;;  %v8533_v51 = vld [vmem:[#allocation19_spill] sm:$0xff] }
 0x30e   : > { %v1910_v34 = vclz %v5577_v46  ;;  %v2025_v30 = vand.u32 2147483647, %v2024_v10  ;;  %v5585_v4 = vmin.u32 %v2114_v5, %v7697_v1  ;;  %v2219_v53 = vclz %v5589_v6 }
 0x30f   : > { %v1711_v15 = vor.u32 %v1710_v60, %v1709_v29  ;;  %v2320_v35 = vsub.s32 0, %v7709_v26  ;;  %v1716_v39 = vand.u32 2147483647, %v1715_v9  ;;  %v2027_v47 = vcvt.s32.f32 %v2020_v14 }
 0x310   : > { %v5597_v57 = vmin.u32 %v2423_v18, %v7703_v0  ;;  %v5578_v3 = vadd.s32 4294967294, %v1910_v34  ;;  %v2116_v12 = vclz %v5585_v4  ;;  %v5590_v28 = vadd.s32 4294967294, %v2219_v53 }
 0x311   : > { %v1718_v19 = vcvt.s32.f32 %v1711_v15  ;;  %v2028_v31 = vmul.f32 %v2027_v47, %v2025_v30  ;;  %v5593_v17 = vmin.u32 %v2320_v35, %v7709_v26  ;;  %vm1947_vm5 = vcmp.lt.s32.totalorder %v8532_v54, 0 }
 0x312   : > { %v2425_v13 = vclz %v5597_v57  ;;  %vm5579_vm3 = vcmp.lt.s32.totalorder %v5578_v3, 0  ;;  %v5586_v48 = vadd.s32 4294967294, %v2116_v12  ;;  %vm5591_vm4 = vcmp.lt.s32.totalorder %v5590_v28, 0 }
 0x313   : > { %v1719_v58 = vmul.f32 %v1718_v19, %v1716_v39  ;;  %v2029_v63 = vxor.u32 2147483648, %v2028_v31  ;;  %v2322_v20 = vclz %v5593_v17  ;;  %v1913_v40 = vsel %vm5579_vm3, 0, %v5578_v3 }
 0x314   : > { %v5598_v32 = vadd.s32 4294967294, %v2425_v13  ;;  %v2222_v11 = vsel %vm5591_vm4, 0, %v5590_v28  ;;  %vm5587_vm6 = vcmp.lt.s32.totalorder %v5586_v48, 0  ;;  %vm1638_vm7 = vcmp.lt.s32.totalorder %v8533_v51, 0 }
 0x315   : > { %v2030_v41 = vsel %vm1947_vm5, %v2029_v63, %v2028_v31  ;;  %v1918_v46 = vsub.s32 4294967266, %v1913_v40  ;;  %v5594_v60 = vadd.s32 4294967294, %v2322_v20  ;;  %v8534_v21 = vand.u32 2147483647, %v8532_v54 }
 0x316   : > { %vm5599_vm8 = vcmp.lt.s32.totalorder %v5598_v32, 0  ;;  %v2227_v5 = vsub.s32 4294967266, %v2222_v11  ;;  %v2119_v6 = vsel %vm5587_vm6, 0, %v5586_v48  ;;  %v8537_v29 = vand.u32 2147483647, %v8533_v51  ;;  %v8540_v48 = vld [vmem:[#allocation37_spill] sm:$0xff] }
 0x317   : > { %vm7727_vm9 = vcmp.le.f32.partialorder %v8534_v21, 0.7853982  ;;  %v1919_v14 = vadd.s32 127, %v1918_v46  ;;  %v7740_v18 = vsel %vm5599_vm8, 0, %v5598_v32  ;;  %vm5595_vm11 = vcmp.lt.s32.totalorder %v5594_v60, 0  ;;  %v8541_v32 = vld [vmem:[#allocation35_spill] sm:$0xff] }
 0x318   : > { %v2033_v7 = vsel %vm7727_vm9, %v8532_v54, %v2030_v41  ;;  %vm7736_vm10 = vcmp.le.f32.partialorder %v8537_v29, 0.7853982  ;;  %v1914_v15 = vsub.s32 32, %v1913_v40  ;;  %v2228_v30 = vadd.s32 127, %v2227_v5 }
 0x319   : > { %v6378_v56 = vpop.eup %6377  ;;  %6379 = vcosq.f32 %v2033_v7  ;;  %v2433_v4 = vsub.s32 4294967266, %v7740_v18  ;;  %v7746_v53 = vsel %vm5595_vm11, 0, %v5594_v60  ;;  %v1898_v35 = vadd.s32 %v7227_v42, %v7233_v38 }
 0x31a   : > { %v7715_v33 = vmul.f32 %v6378_v56, %v3397_v43  ;;  %v1720_v43 = vxor.u32 2147483648, %v1719_v58  ;;  %v2124_v56 = vsub.s32 4294967266, %v2119_v6  ;;  %6381 = vsinq.f32 %v2033_v7 }
 0x31b   : > { %v1920_v39 = vshll.u32 %v1919_v14, 23  ;;  %v2223_v47 = vsub.s32 32, %v2222_v11  ;;  %v1916_v3 = vshrl.u32 %v1898_v35, %v1914_v15  ;;  %v2207_v19 = vadd.s32 %v7345_v36, %v7330_v59 }
 0x31c   : > { %v1721_v62 = vsel %vm1638_vm7, %v1720_v43, %v1719_v58  ;;  %v2125_v57 = vadd.s32 127, %v2124_v56  ;;  %v2229_v31 = vshll.u32 %v2228_v30, 23  ;;  %v2330_v12 = vsub.s32 4294967266, %v7746_v53 }
 0x31d   : > { %v1724_v34 = vsel %vm7736_vm10, %v8533_v51, %v1721_v62  ;;  %v2120_v28 = vsub.s32 32, %v2119_v6  ;;  %v2434_v17 = vadd.s32 127, %v2433_v4  ;;  %v1915_v58 = vshll.u32 %v7685_v45, %v1913_v40 }
 0x31e   : > { %6383 = vcosq.f32 %v1724_v34  ;;  %v1921_v13 = vor.u32 4788187, %v1920_v39  ;;  %v2225_v63 = vshrl.u32 %v2207_v19, %v2223_v47  ;;  %v2031_v20 = vsub.s32 4, %v8540_v48 }
 0x31f   : > { %6385 = vsinq.f32 %v1724_v34  ;;  %v2104_v42 = vadd.s32 %v7424_v8, %v7453_v2  ;;  %v2126_v38 = vshll.u32 %v2125_v57, 23  ;;  %v2429_v43 = vsub.s32 32, %v7740_v18 }
 0x320   : > { %v1722_v41 = vsub.s32 4, %v8541_v32  ;;  %v1917_v59 = vor.u32 %v1916_v3, %v1915_v58  ;;  %v2224_v36 = vshll.u32 %v7689_v49, %v2222_v11  ;;  %v2230_v46 = vor.u32 4788187, %v2229_v31 }
 0x321   : > { %v2331_v60 = vadd.s32 127, %v2330_v12  ;;  %v2122_v62 = vshrl.u32 %v2104_v42, %v2120_v28  ;;  %v2413_v45 = vadd.s32 %v7583_v16, %v7562_v44  ;;  %v2435_v40 = vshll.u32 %v2434_v17, 23 }
 0x322   : > { %v1922_v21 = vand.u32 2147483647, %v1921_v13  ;;  %v2226_v5 = vor.u32 %v2225_v63, %v2224_v36  ;;  %v2326_v7 = vsub.s32 32, %v7746_v53  ;;  %v2032_v8 = vsel %vm1947_vm5, %v2031_v20, %v8540_v48  ;;  %v8542_v20 = vld [vmem:[#allocation25_spill] sm:$0xff] }
 0x323   : > { %v2121_v2 = vshll.u32 %v7697_v1, %v2119_v6  ;;  %v2127_v29 = vor.u32 4788187, %v2126_v38  ;;  %v2431_v14 = vshrl.u32 %v2413_v45, %v2429_v43  ;;  %v1723_v49 = vsel %vm1638_vm7, %v1722_v41, %v8541_v32 }
 0x324   : > { %v1924_v44 = vcvt.s32.f32 %v1917_v59  ;;  %v2231_v16 = vand.u32 2147483647, %v2230_v46  ;;  %v2310_v34 = vadd.s32 %v7611_v52, %v7620_v50  ;;  %v2332_v56 = vshll.u32 %v2331_v60, 23 }
 0x325   : > { %v2123_v30 = vor.u32 %v2122_v62, %v2121_v2  ;;  %v2430_v1 = vshll.u32 %v7703_v0, %v7740_v18  ;;  %v2436_v6 = vor.u32 4788187, %v2435_v40  ;;  %v7780_v4 = vsel %vm7727_vm9, 0, %v2032_v8 }
 0x326   : > { %v7770_v11 = vpop.eup %6379  ;;  %v2233_v39 = vcvt.s32.f32 %v2226_v5  ;;  %v2328_v47 = vshrl.u32 %v2310_v34, %v2326_v7  ;;  %v7786_v57 = vsel %vm7736_vm10, 0, %v1723_v49  ;;  %v1925_v50 = vmul.f32 %v1924_v44, %v1922_v21  ;;  %v8543_v21 = vld [vmem:[#allocation31_spill] sm:$0xff] }
 0x327   : > { %v7774_v15 = vpop.eup %6381  ;;  %v2128_v3 = vand.u32 2147483647, %v2127_v29  ;;  %v2432_v19 = vor.u32 %v2431_v14, %v2430_v1  ;;  %v2327_v0 = vshll.u32 %v7709_v26, %v7746_v53  ;;  %v2333_v10 = vor.u32 4788187, %v2332_v56  ;;  %v8547_v14 = vld [vmem:[#allocation34_spill] sm:$0xff] }
 0x328   : > { %v2234_v31 = vmul.f32 %v2233_v39, %v2231_v16  ;;  %v2038_v18 = vand.u32 3, %v7780_v4  ;;  %v2130_v12 = vcvt.s32.f32 %v2123_v30  ;;  %v2437_v28 = vand.u32 2147483647, %v2436_v6 }
 0x329   : > { %v2044_v17 = vxor.u32 2147483648, %v7770_v11  ;;  %v1729_v9 = vand.u32 3, %v7786_v57  ;;  %v2329_v58 = vor.u32 %v2328_v47, %v2327_v0  ;;  %v2041_v13 = vxor.u32 2147483648, %v7774_v15 }
 0x32a   : > { %vm1844_vm12 = vcmp.lt.s32.totalorder %v8542_v20, 0  ;;  %v1926_v42 = vxor.u32 2147483648, %v1925_v50  ;;  %v2131_v26 = vmul.f32 %v2130_v12, %v2128_v3  ;;  %v2439_v53 = vcvt.s32.f32 %v2432_v19 }
 0x32b   : > { %v7782_v35 = vpop.eup %6383  ;;  %v2235_v38 = vxor.u32 2147483648, %v2234_v31  ;;  %v2334_v43 = vand.u32 2147483647, %v2333_v10  ;;  %vm2040_vm13 = vcmp.eq.s32.totalorder %v2038_v18, 0  ;;  %vm2043_vm14 = vcmp.eq.s32.totalorder %v2038_v18, 2 }
 0x32c   : > { %v7788_v52 = vpop.eup %6385  ;;  %v1735_v48 = vxor.u32 2147483648, %v7782_v35  ;;  %v2440_v32 = vmul.f32 %v2439_v53, %v2437_v28  ;;  %v2045_v41 = vsel %vm2043_vm14, %v2044_v17, %v7774_v15  ;;  %vm1731_vm15 = vcmp.eq.s32.totalorder %v1729_v9, 0 }
 0x32d   : > { %v1732_v63 = vxor.u32 2147483648, %v7788_v52  ;;  %vm1734_vm0 = vcmp.eq.s32.totalorder %v1729_v9, 2  ;;  %v2336_v59 = vcvt.s32.f32 %v2329_v58  ;;  %v2042_v36 = vsel %vm2040_vm13, %v7770_v11, %v2041_v13 }
 0x32e   : > { %v1736_v60 = vsel %vm1734_vm0, %v1735_v48, %v7788_v52  ;;  %v1927_v62 = vsel %vm1844_vm12, %v1926_v42, %v1925_v50  ;;  %v2132_v45 = vxor.u32 2147483648, %v2131_v26  ;;  %vm2039_vm1 = vcmp.lt.s32.totalorder %v2038_v18, 2 }
 0x32f   : > { %v1733_v46 = vsel %vm1731_vm15, %v7782_v35, %v1732_v63  ;;  %v2337_v40 = vmul.f32 %v2336_v59, %v2334_v43  ;;  %vm1730_vm3 = vcmp.lt.s32.totalorder %v1729_v9, 2  ;;  %vm2153_vm4 = vcmp.lt.s32.totalorder %v8543_v21, 0 }
 0x330   : > { %v2046_v5 = vsel %vm2039_vm1, %v2042_v36, %v2045_v41  ;;  %v1737_v7 = vsel %vm1730_vm3, %v1733_v46, %v1736_v60  ;;  %v8544_v8 = vand.u32 2147483647, %v8542_v20  ;;  %v2236_v29 = vsel %vm2153_vm4, %v2235_v38, %v2234_v31 }
 0x331   : > { %vm2050_vm6 = vcmp.lt.s32.totalorder %v8547_v14, 0  ;;  %v2441_v49 = vxor.u32 2147483648, %v2440_v32  ;;  %vm2359_vm7 = vcmp.lt.s32.totalorder %v7191_v37, 0  ;;  %vm2037_vm8 = vweird.f32 %v8532_v54 }
 0x332   : > { %vm7816_vm5 = vcmp.le.f32.partialorder %v8544_v8, 0.7853982  ;;  %v2133_v16 = vsel %vm2050_vm6, %v2132_v45, %v2131_v26  ;;  %vm1728_vm9 = vweird.f32 %v8533_v51  ;;  %v2338_v34 = vxor.u32 2147483648, %v2337_v40 }
 0x333   : > { %v1930_v44 = vsel %vm7816_vm5, %v8542_v20, %v1927_v62  ;;  %v2047_v56 = vsel %vm2037_vm8, nan, %v2046_v5  ;;  %v1738_v1 = vsel %vm1728_vm9, nan, %v1737_v7  ;;  %v8548_v39 = vand.u32 2147483647, %v8543_v21 }
 0x334   : > { %6387 = vcosq.f32 %v1930_v44  ;;  %v2442_v31 = vsel %vm2359_vm7, %v2441_v49, %v2440_v32  ;;  %v8551_v0 = vand.u32 2147483647, %v8547_v14  ;;  %vm2256_vm13 = vcmp.lt.s32.totalorder %v7245_v23, 0 }
 0x335   : > { %vm7841_vm10 = vcmp.le.f32.partialorder %v8548_v39, 0.7853982  ;;  %6389 = vsinq.f32 %v1930_v44  ;;  %v2339_v9 = vsel %vm2256_vm13, %v2338_v34, %v2337_v40  ;;  %v8554_v58 = vand.u32 2147483647, %v7191_v37 }
 0x336   : > { %v2239_v19 = vsel %vm7841_vm10, %v8543_v21, %v2236_v29  ;;  %vm7854_vm11 = vcmp.le.f32.partialorder %v8551_v0, 0.7853982  ;;  %v1928_v26 = vsub.s32 4, %v7671_v25  ;;  %v2969_v38 = vadd.s32 3, %v7780_v4 }
 0x337   : > { %v2136_v28 = vsel %vm7854_vm11, %v8547_v14, %v2133_v16  ;;  %6391 = vcosq.f32 %v2239_v19  ;;  %vm7870_vm14 = vcmp.le.f32.partialorder %v8554_v58, 0.7853982  ;;  %vm7885_vm15 = vcmp.le.f32.partialorder %v2254_v22, 0.7853982 }
 0x338   : > { %6393 = vsinq.f32 %v2239_v19  ;;  %v2445_v53 = vsel %vm7870_vm14, %v7191_v37, %v2442_v31  ;;  %v2342_v32 = vsel %vm7885_vm15, %v7245_v23, %v2339_v9  ;;  %v2657_v41 = vadd.s32 3, %v7786_v57 }
 0x339   : > { %6395 = vcosq.f32 %v2136_v28  ;;  %v1929_v59 = vsel %vm1844_vm12, %v1928_v26, %v7671_v25  ;;  %v2970_v4 = vand.u32 3, %v2969_v38  ;;  %v2237_v36 = vsub.s32 4, %v7674_v27 }
 0x33a   : > { %6397 = vsinq.f32 %v2136_v28  ;;  %v2134_v22 = vsub.s32 4, %v7679_v24  ;;  %v2658_v46 = vand.u32 3, %v2657_v41  ;;  %v1931_v60 = vsel %vm7816_vm5, 0, %v1929_v59 }
 0x33b   : > { %6399 = vcosq.f32 %v2445_v53  ;;  %vm2971_vm0 = vcmp.lt.s32.totalorder %v2970_v4, 2  ;;  %vm2972_vm1 = vcmp.eq.s32.totalorder %v2970_v4, 0  ;;  %v2238_v25 = vsel %vm2153_vm4, %v2237_v36, %v7674_v27 }
 0x33c   : > { %6401 = vsinq.f32 %v2445_v53  ;;  %v2443_v57 = vsub.s32 4, %v7682_v61  ;;  %vm2975_vm12 = vcmp.eq.s32.totalorder %v2970_v4, 2  ;;  %v1935_v40 = vand.u32 3, %v1931_v60 }
 0x33d   : > { %6403 = vcosq.f32 %v2342_v32  ;;  %v2135_v5 = vsel %vm2050_vm6, %v2134_v22, %v7679_v24  ;;  %v2340_v7 = vsub.s32 4, %v7691_v55  ;;  %v2974_v8 = vsel %vm2972_vm1, %v7770_v11, %v2041_v13 }
 0x33e   : > { %6405 = vsinq.f32 %v2342_v32  ;;  %v2977_v27 = vsel %vm2975_vm12, %v2044_v17, %v7774_v15  ;;  %vm2663_vm3 = vcmp.eq.s32.totalorder %v2658_v46, 2  ;;  %v2865_v2 = vadd.s32 3, %v1931_v60 }
 0x33f   : > { %vm2660_vm4 = vcmp.eq.s32.totalorder %v2658_v46, 0  ;;  %v2665_v49 = vsel %vm2663_vm3, %v1735_v48, %v7788_v52  ;;  %v2240_v44 = vsel %vm7841_vm10, 0, %v2238_v25  ;;  %v2137_v17 = vsel %vm7854_vm11, 0, %v2135_v5 }
 0x340   : > { %v2662_v11 = vsel %vm2660_vm4, %v7782_v35, %v1732_v63  ;;  %v2444_v13 = vsel %vm2359_vm7, %v2443_v57, %v7682_v61  ;;  %v7940_v34 = vsel %vm2971_vm0, %v2974_v8, %v2977_v27  ;;  %vm2659_vm5 = vcmp.lt.s32.totalorder %v2658_v46, 2 }
 0x341   : > { %v7900_v62 = vpop.eup %6387  ;;  %vm1934_vm6 = vweird.f32 %v8542_v20  ;;  %vm1936_vm10 = vcmp.lt.s32.totalorder %v1935_v40, 2  ;;  %v2341_v35 = vsel %vm2256_vm13, %v2340_v7, %v7691_v55  ;;  %vm1937_vm11 = vcmp.eq.s32.totalorder %v1935_v40, 0 }
 0x342   : > { %v7906_v45 = vpop.eup %6389  ;;  %v1941_v24 = vxor.u32 2147483648, %v7900_v62  ;;  %vm1940_vm1 = vcmp.eq.s32.totalorder %v1935_v40, 2  ;;  %v7948_v63 = vand.u32 3, %v2865_v2  ;;  %v2244_v61 = vand.u32 3, %v2240_v44 }
 0x343   : > { %v1938_v15 = vxor.u32 2147483648, %v7906_v45  ;;  %v2141_v47 = vand.u32 3, %v2137_v17  ;;  %v7970_v0 = vsel %vm7885_vm15, 0, %v2341_v35  ;;  %vm2243_vm7 = vweird.f32 %v8543_v21 }
 0x344   : > { %v7918_v29 = vpop.eup %6391  ;;  %v1942_v39 = vsel %vm1940_vm1, %v1941_v24, %v7906_v45  ;;  %v3177_v28 = vadd.s32 3, %v2240_v44  ;;  %vm2245_vm13 = vcmp.lt.s32.totalorder %v2244_v61, 2  ;;  %vm2249_vm0 = vcmp.eq.s32.totalorder %v2244_v61, 2 }
 0x345   : > { %v7833_v30 = vpop.permute.xlu1 %2474  ;;  %v7837_v6 = vpop.permute.xlu0 %2468  ;;  %v2250_v31 = vxor.u32 2147483648, %v7918_v29  ;;  %vm2140_vm12 = vweird.f32 %v8547_v14  ;;  %vm2871_vm15 = vcmp.eq.s32.totalorder %v7948_v63, 2  ;;  %vm2143_vm3 = vcmp.eq.s32.totalorder %v2141_v47, 0 }
 0x346   : > { %v2495_v50 = vmul.f32 %v7833_v30, %v2047_v56  ;;  %v2492_v3 = vmul.f32 %v7837_v6, %v1738_v1  ;;  %v7926_v16 = vpop.eup %6393  ;;  %v7952_v1 = vsel %vm2659_vm5, %v2662_v11, %v2665_v49  ;;  %vm2146_vm4 = vcmp.eq.s32.totalorder %v2141_v47, 2 }
 0x347   : > { %v7937_v48 = vpop.eup %6395  ;;  %v2247_v19 = vxor.u32 2147483648, %v7926_v16  ;;  %v2347_v38 = vand.u32 3, %v7970_v0  ;;  %vm2868_vm5 = vcmp.eq.s32.totalorder %v7948_v63, 0  ;;  %v2251_v32 = vsel %vm2249_vm0, %v2250_v31, %v7926_v16 }
 0x348   : > { %v7859_v18 = vadd.f32 1.0, %v2495_v50  ;;  %v7861_v12 = vadd.f32 1.0, %v2492_v3  ;;  %v7946_v52 = vpop.eup %6397  ;;  %v7959_v50 = vsel %vm7870_vm14, 0, %v2444_v13  ;;  %v1939_v3 = vsel %vm1937_vm11, %v7900_v62, %v1938_v15 }
 0x349   : > { %v7950_v56 = vpop.eup %6399  ;;  %v2144_v9 = vxor.u32 2147483648, %v7946_v52  ;;  %v2147_v58 = vxor.u32 2147483648, %v7937_v48  ;;  %vm2246_vm14 = vcmp.eq.s32.totalorder %v2244_v61, 0  ;;  %v2450_v26 = vand.u32 3, %v7959_v50 }
 0x34a   : > { %2530 = vrot.lane.b32.xlu1 %v7859_v18, %s6461_s27  ;;  %2524 = vrot.lane.b32.xlu0 %v7861_v12, %s6461_s27  ;;  %v7961_v55 = vpop.eup %6401  ;;  %v1943_v53 = vsel %vm1936_vm10, %v1939_v3, %v1942_v39  ;;  %v2248_v43 = vsel %vm2246_vm14, %v7918_v29, %v2247_v19  ;;  %v2456_v59 = vxor.u32 2147483648, %v7950_v56  ;;  %6407 = vrcp.f32 %v7861_v12 }
 0x34b   : > { %v7972_v10 = vpop.eup %6403  ;;  %v2453_v41 = vxor.u32 2147483648, %v7961_v55  ;;  %v2145_v4 = vsel %vm2143_vm3, %v7937_v48, %v2144_v9  ;;  %v2148_v36 = vsel %vm2146_vm4, %v2147_v58, %v7946_v52  ;;  %v1944_v60 = vsel %vm1934_vm6, nan, %v1943_v53 }
 0x34c   : > { %v7977_v42 = vpop.eup %6405  ;;  %v2353_v46 = vxor.u32 2147483648, %v7972_v10  ;;  %vm2142_vm10 = vcmp.lt.s32.totalorder %v2141_v47, 2  ;;  %vm2452_vm11 = vcmp.eq.s32.totalorder %v2450_v26, 0  ;;  %v2252_v57 = vsel %vm2245_vm13, %v2248_v43, %v2251_v32 }
 0x34d   : > { %v2350_v22 = vxor.u32 2147483648, %v7977_v42  ;;  %vm2455_vm1 = vcmp.eq.s32.totalorder %v2450_v26, 2  ;;  %vm2349_vm14 = vcmp.eq.s32.totalorder %v2347_v38, 0  ;;  %vm2352_vm0 = vcmp.eq.s32.totalorder %v2347_v38, 2 }
 0x34e   : > { %v2149_v5 = vsel %vm2142_vm10, %v2145_v4, %v2148_v36  ;;  %v2454_v7 = vsel %vm2452_vm11, %v7950_v56, %v2453_v41  ;;  %v2457_v12 = vsel %vm2455_vm1, %v2456_v59, %v7961_v55  ;;  %6409 = vrcp.f32 %v7859_v18 }
 0x34f   : > { %v3073_v8 = vadd.s32 3, %v2137_v17  ;;  %v2351_v27 = vsel %vm2349_vm14, %v7972_v10, %v2350_v22  ;;  %v2354_v2 = vsel %vm2352_vm0, %v2353_v46, %v7977_v42  ;;  %v2253_v44 = vsel %vm2243_vm7, nan, %v2252_v57 }
 0x350   : > { %v8023_v11 = vand.u32 3, %v3177_v28  ;;  %vm2451_vm13 = vcmp.lt.s32.totalorder %v2450_v26, 2  ;;  %v2150_v17 = vsel %vm2140_vm12, nan, %v2149_v5  ;;  %vm2348_vm3 = vcmp.lt.s32.totalorder %v2347_v38, 2 }
 0x351   : > { %v2458_v61 = vsel %vm2451_vm13, %v2454_v7, %v2457_v12  ;;  %v2873_v39 = vsel %vm2871_vm15, %v1941_v24, %v7906_v45  ;;  %v2355_v3 = vsel %vm2348_vm3, %v2351_v27, %v2354_v2  ;;  %v2870_v28 = vsel %vm2868_vm5, %v7900_v62, %v1938_v15 }
 0x352   : > { %v3074_v53 = vand.u32 3, %v3073_v8  ;;  %vm2449_vm4 = vweird.f32 %v7191_v37  ;;  %v3385_v43 = vadd.s32 3, %v7959_v50  ;;  %vm2346_vm15 = vweird.f32 %v7245_v23  ;;  %v8560_v23 = vld [vmem:[#allocation18_spill] sm:$0xff] }
 0x353   : > { %v2459_v24 = vsel %vm2449_vm4, nan, %v2458_v61  ;;  %vm2867_vm10 = vcmp.lt.s32.totalorder %v7948_v63, 2  ;;  %v2356_v62 = vsel %vm2346_vm15, nan, %v2355_v3  ;;  %v2667_v50 = vsel %vm1728_vm9, nan, %v7952_v1 }
 0x354   : > { %v3281_v4 = vadd.s32 3, %v7970_v0  ;;  %v2874_v63 = vsel %vm2867_vm10, %v2870_v28, %v2873_v39  ;;  %vm3180_vm5 = vcmp.eq.s32.totalorder %v8023_v11, 0  ;;  %vm3183_vm11 = vcmp.eq.s32.totalorder %v8023_v11, 2 }
 0x355   : > { %vm3076_vm1 = vcmp.eq.s32.totalorder %v3074_v53, 0  ;;  %vm3079_vm14 = vcmp.eq.s32.totalorder %v3074_v53, 2  ;;  %v3386_v57 = vand.u32 3, %v3385_v43  ;;  %v3182_v51 = vsel %vm3180_vm5, %v7918_v29, %v2247_v19  ;;  %v8563_v43 = vld [vmem:[#allocation6_spill] sm:$0xff] }
 0x356   : > { %v3185_v1 = vsel %vm3183_vm11, %v2250_v31, %v7926_v16  ;;  %v3081_v0 = vsel %vm3079_vm14, %v2147_v58, %v7946_v52  ;;  %v3396_v7 = vmul.f32 %v2667_v50, %v7837_v6  ;;  %v3078_v12 = vsel %vm3076_vm1, %v7937_v48, %v2144_v9  ;;  %v8566_v50 = vld [vmem:[#allocation26_spill] sm:$0xff] }
 0x357   : > { %v6408_v5 = vpop.eup %6407  ;;  %v3282_v8 = vand.u32 3, %v3281_v4  ;;  %v2979_v29 = vsel %vm2037_vm8, nan, %v7940_v34  ;;  %vm3179_vm9 = vcmp.lt.s32.totalorder %v8023_v11, 2  ;;  %vm3075_vm0 = vcmp.lt.s32.totalorder %v3074_v53, 2 }
 0x358   : > { %v3405_v19 = vmul.f32 %v6408_v5, %v3396_v7  ;;  %v2875_v6 = vsel %vm1934_vm6, nan, %v2874_v63  ;;  %vm3388_vm13 = vcmp.eq.s32.totalorder %v3386_v57, 0  ;;  %vm3391_vm3 = vcmp.eq.s32.totalorder %v3386_v57, 2  ;;  %v8567_v63 = vld [vmem:[#allocation24_spill] sm:$0xff]  ;;  %v8569_v5 = vld [vmem:[#allocation29_spill] sm:$0xff] }
 0x359   : > { %v3399_v48 = vmul.f32 %v2979_v29, %v7833_v30  ;;  %v3186_v52 = vsel %vm3179_vm9, %v3182_v51, %v3185_v1  ;;  %v3082_v31 = vsel %vm3075_vm0, %v3078_v12, %v3081_v0  ;;  %v3393_v9 = vsel %vm3391_vm3, %v2456_v59, %v7961_v55 }
 0x35a   : > { %v3390_v20 = vsel %vm3388_vm13, %v7950_v56, %v2453_v41  ;;  %vm3284_vm8 = vcmp.eq.s32.totalorder %v3282_v8, 0  ;;  %vm3287_vm6 = vcmp.eq.s32.totalorder %v3282_v8, 2  ;;  %v3187_v55 = vsel %vm2243_vm7, nan, %v3186_v52 }
 0x35b   : > { %v6410_v16 = vpop.eup %6409  ;;  %v3286_v58 = vsel %vm3284_vm8, %v7972_v10, %v2350_v22  ;;  %vm3387_vm10 = vcmp.lt.s32.totalorder %v3386_v57, 2  ;;  %v3083_v41 = vsel %vm2140_vm12, nan, %v3082_v31  ;;  %vm3283_vm5 = vcmp.lt.s32.totalorder %v3282_v8, 2  ;;  %v8570_v31 = vld [vmem:[#allocation12_spill] sm:$0xff] }
 0x35c   : > { %v3411_v34 = vmul.f32 %v6410_v16, %v3399_v48  ;;  %vm3420_vm7 = vcmask 130048  }
 0x363   : > { %v8004_v25 = vpop.permute.xlu0 %2472 }
 0x364   : > { %v2494_v40 = vmul.f32 %v8004_v25, %v1944_v60  ;;  %v3398_v54 = vmul.f32 %v2875_v6, %v8004_v25  ;;  %v3394_v25 = vsel %vm3387_vm10, %v3390_v20, %v3393_v9  ;;  %v8571_v20 = vld [vmem:[#allocation14_spill] sm:$0xff] }
 0x366   : > { %v2502_v49 = vadd.f32 1.0, %v2494_v40  ;;  %v8025_v13 = vpop.permute.xlu1 %2478 }
 0x367   : > { %v2497_v18 = vmul.f32 %v8025_v13, %v2253_v44  ;;  %v8030_v35 = vpop.permute.xlu0 %2476  ;;  %v3401_v56 = vmul.f32 %v3187_v55, %v8025_v13 }
 0x368   : > { %6411 = vrcp.f32 %v2502_v49  ;;  %2528 = vrot.lane.b32.xlu0 %v2502_v49, %s6461_s27  ;;  %v2496_v47 = vmul.f32 %v8030_v35, %v2150_v17  ;;  %v3400_v22 = vmul.f32 %v3083_v41, %v8030_v35  ;;  %v8559_v35 = vld [vmem:[#allocation23_spill] sm:$0xff]  ;;  %v8573_v41 = vld [vmem:[#allocation8_spill] sm:$0xff] }
 0x369   : > { %v2505_v26 = vadd.f32 1.0, %v2497_v18 }
 0x36a   : > { %v2504_v38 = vadd.f32 1.0, %v2496_v47  ;;  %v8048_v32 = vpop.permute.xlu1 %2482 }
 0x36b   : > { %6413 = vrcp.f32 %v2505_v26  ;;  %v2499_v45 = vmul.f32 %v8048_v32, %v2459_v24  ;;  %2534 = vrot.lane.b32.xlu1 %v2505_v26, %s6461_s27  ;;  %v8056_v15 = vpop.permute.xlu0 %2480  ;;  %v8562_v24 = vld [vmem:[#allocation11_spill] sm:$0xff] }
 0x36c   : > { %6415 = vrcp.f32 %v2504_v38  ;;  %v2498_v36 = vmul.f32 %v8056_v15, %v2356_v62  ;;  %2532 = vrot.lane.b32.xlu0 %v2504_v38, %s6461_s27  ;;  %v8561_v38 = vld [vmem:[#allocation10_spill] sm:$0xff] }
 0x36d   : > { %v2507_v60 = vadd.f32 1.0, %v2499_v45  ;;  %v8564_v45 = vld [vmem:[#allocation22_spill] sm:$0xff] }
 0x36e   : > { %v2506_v40 = vadd.f32 1.0, %v2498_v36 }
 0x36f   : > { %6417 = vrcp.f32 %v2507_v60  ;;  %2538 = vrot.lane.b32.xlu1 %v2507_v60, %s6461_s27  ;;  %v8568_v60 = vld [vmem:[#allocation30_spill] sm:$0xff] }
 0x370   : > { %6419 = vrcp.f32 %v2506_v40  ;;  %2536 = vrot.lane.b32.xlu0 %v2506_v40, %s6461_s27 }
 0x371   : > { %6421 = vtanh.f32 %v8559_v35 }
 0x373   : > { %3749 = vrot.lane.b32.xlu1 %v7715_v33, %s6461_s27  ;;  %v3289_v33 = vsel %vm3287_vm6, %v2353_v46, %v7977_v42  ;;  %v3395_v46 = vsel %vm2449_vm4, nan, %v3394_v25 }
 0x374   : > { %3747 = vrot.lane.b32.xlu0 %v3405_v19, %s6461_s27  ;;  %v3290_v2 = vsel %vm3283_vm5, %v3286_v58, %v3289_v33  ;;  %v3403_v49 = vmul.f32 %v3395_v46, %v8048_v32  ;;  %v8572_v33 = vld [vmem:[#allocation7_spill] sm:$0xff] }
 0x375   : > { %v6412_v30 = vpop.eup %6411  ;;  %v3291_v14 = vsel %vm2346_vm15, nan, %v3290_v2  ;;  %v8577_v46 = vld [vmem:[#allocation15_spill] sm:$0xff] }
 0x376   : > { %v3409_v59 = vmul.f32 %v6412_v30, %v3398_v54  ;;  %v3402_v11 = vmul.f32 %v3291_v14, %v8056_v15  ;;  %v8565_v15 = vld [vmem:[#allocation21_spill] sm:$0xff] }
 0x377   : > { %3834 = vrot.lane.b32.xlu1 %v3411_v34, %s6461_s27 }
 0x378   : > { %v6414_v27 = vpop.eup %6413  ;;  %3832 = vrot.lane.b32.xlu0 %v3409_v59, %s6461_s27 }
 0x379   : > { %v6416_v10 = vpop.eup %6415  ;;  %v3415_v42 = vmul.f32 %v6414_v27, %v3401_v56 }
 0x37a   : > { %v3413_v21 = vmul.f32 %v6416_v10, %v3400_v22  ;;  %v8574_v22 = vld [vmem:[#allocation13_spill] sm:$0xff] }
 0x37b   : > { %3919 = vrot.lane.b32.xlu1 %v3415_v42, %s6461_s27  ;;  %v8575_v10 = vld [vmem:[#allocation9_spill] sm:$0xff]  ;;  %v8576_v42 = vld [vmem:[#allocation16_spill] sm:$0xff] }
 0x37c   : > { %v6418_v44 = vpop.eup %6417  ;;  %3917 = vrot.lane.b32.xlu0 %v3413_v21, %s6461_s27 }
 0x37d   : > { %v6420_v13 = vpop.eup %6419  ;;  %v3419_v18 = vmul.f32 %v6418_v44, %v3403_v49  ;;  %v8578_v49 = vld [vmem:[#allocation2_spill] sm:$0xff]  ;;  %v8579_v44 = vld [vmem:[#allocation17_spill] sm:$0xff] }
 0x37e   : > { %v3417_v17 = vmul.f32 %v6420_v13, %v3402_v11  ;;  %v2527_v37 = vpop.permute.xlu1 %2526  ;;  %v6422_v39 = vpop.eup %6421  ;;  %v8580_v11 = vld [vmem:[#allocation4_spill] sm:$0xff] }
 0x37f   : > { %4004 = vrot.lane.b32.xlu1 %v3419_v18, %s6461_s27  ;;  %6423 = vrcp.f32 %v2527_v37  ;;  %v8581_v18 = vld [vmem:[#allocation3_spill] sm:$0xff]  ;;  %v8251_v37 = vld [vmem:[%s8390_s5] sm:$0xff] }
 0x380   : > { %4002 = vrot.lane.b32.xlu0 %v3417_v17, %s6461_s27  ;;  %v8582_v17 = vld [vmem:[#allocation5_spill] sm:$0xff] }
 0x38c   : > { %v6424_v47 = vpop.eup %6423 }
 0x3bc   : > { %v2525_v61 = vpop.permute.xlu0 %2524  ;;  %v2531_v32 = vpop.permute.xlu1 %2530 }
 0x3bd   : > { %6425 = vrcp.f32 %v2525_v61 }
 0x3be   : > { %6427 = vtanh.f32 %v8560_v23 }
 0x3bf   : > { %6429 = vtanh.f32 %v8564_v45 }
 0x3c0   : > { %6431 = vrcp.f32 %v2531_v32 }
 0x3ca   : > { %v6426_v3 = vpop.eup %6425 }
 0x3cb   : > { %v6428_v28 = vpop.eup %6427  ;;  %v8124_v26 = vmul.f32 %v6426_v3, %v6422_v39 }
 0x3cc   : > { %v8126_v53 = vmul.f32 %v6428_v28, %v6424_v47  ;;  %v6430_v51 = vpop.eup %6429 }
 0x3cd   : > { %6104 = vmatprep.mubr.msk.f32.mxu0 %vm3420_vm7, %v8124_v26  ;;  %v6432_v1 = vpop.eup %6431 }
 0x3ce   : > { %6105 = vmatmul.mubr.msk.f32.vlgmr.msra.gmra.mxu0 %vm3420_vm7, %v8126_v53 }
 0x3cf   : > { %6115 = vmatpush3.msra.mxu0 %v8561_v38 }
 0x3d0   : > { %6116 = vmatprep.subr.mxu0 %v8562_v24 }
 0x3d1   : > { %6117 = vmatpush3.msra.mxu0 %v8562_v24 }
 0x3d2   : > { %6128 = vmatprep.subr.mxu0 %v8563_v43 }
 0x3da   : > { %v2529_v62 = vpop.permute.xlu0 %2528 }
 0x3db   : > { %6433 = vrcp.f32 %v2529_v62 }
 0x3dc   : > { %6435 = vtanh.f32 %v8565_v15 }
 0x3dd   : > { %6437 = vtanh.f32 %v8566_v50  ;;  %v2535_v4 = vpop.permute.xlu1 %2534 }
 0x3de   : > { %6439 = vrcp.f32 %v2535_v4  ;;  %v2533_v36 = vpop.permute.xlu0 %2532 }
 0x3df   : > { %6441 = vrcp.f32 %v2533_v36 }
 0x3e0   : > { %6443 = vtanh.f32 %v8567_v63 }
 0x3e1   : > { %6445 = vtanh.f32 %v8568_v60  ;;  %v2539_v57 = vpop.permute.xlu1 %2538 }
 0x3e2   : > { %6447 = vrcp.f32 %v2539_v57  ;;  %v2537_v40 = vpop.permute.xlu0 %2536 }
 0x3e3   : > { %6449 = vrcp.f32 %v2537_v40 }
 0x3e4   : > { %6451 = vtanh.f32 %v8569_v5 }
 0x3e5   : > { %v3750_v52 = vpop.permute.xlu1 %3749 }
 0x3e6   : > { %v3748_v16 = vpop.permute.xlu0 %3747 }
 0x3e8   : > { %v6434_v0 = vpop.eup %6433 }
 0x3e9   : > { %v6436_v7 = vpop.eup %6435  ;;  %v8142_v12 = vmul.f32 %v6434_v0, %v6430_v51  ;;  %v3835_v27 = vpop.permute.xlu1 %3834 }
 0x3ea   : > { %v6438_v8 = vpop.eup %6437  ;;  %v8144_v29 = vmul.f32 %v6436_v7, %v6432_v1  ;;  %v3833_v59 = vpop.permute.xlu0 %3832 }
 0x3eb   : > { %v6440_v19 = vpop.eup %6439  ;;  %6111 = vmatprep.mubr.msk.f32.mxu1 %vm3420_vm7, %v8142_v12 }
 0x3ec   : > { %v6442_v6 = vpop.eup %6441  ;;  %6112 = vmatmul.mubr.msk.f32.vlgmr.msra.gmra.mxu1 %vm3420_vm7, %v8144_v29 }
 0x3ed   : > { %v6444_v48 = vpop.eup %6443  ;;  %6122 = vmatpush3.msra.mxu1 %v8570_v31  ;;  %v8151_v9 = vmul.f32 %v6442_v6, %v6438_v8  ;;  %v3920_v21 = vpop.permute.xlu1 %3919 }
 0x3ee   : > { %v6446_v54 = vpop.eup %6445  ;;  %6123 = vmatprep.subr.mxu1 %v8571_v20  ;;  %v8154_v30 = vmul.f32 %v6444_v48, %v6440_v19  ;;  %v3918_v2 = vpop.permute.xlu0 %3917 }
 0x3ef   : > { %v6448_v34 = vpop.eup %6447  ;;  %6124 = vmatpush3.msra.mxu1 %v8571_v20  ;;  %6118 = vmatprep.mubr.msk.f32.mxu0 %vm3420_vm7, %v8151_v9 }
 0x3f0   : > { %v6450_v58 = vpop.eup %6449  ;;  %6135 = vmatprep.subr.mxu1 %v8572_v33  ;;  %6119 = vmatmul.mubr.msk.f32.vlgmr.msra.gmra.mxu0 %vm3420_vm7, %v8154_v30 }
 0x3f1   : > { %v6452_v55 = vpop.eup %6451  ;;  %6129 = vmatpush3.msra.mxu0 %v8563_v43  ;;  %6132 = vmatprep.mubr.msk.f32.mxu0 %vm3420_vm7, %v3748_v16  ;;  %v8164_v56 = vmul.f32 %v6450_v58, %v6446_v54  ;;  %v4005_v13 = vpop.permute.xlu1 %4004 }
 0x3f2   : > { %6130 = vmatprep.subr.mxu0 %v8573_v41  ;;  %v8167_v25 = vmul.f32 %v6452_v55, %v6448_v34  ;;  %v4003_v14 = vpop.permute.xlu0 %4002 }
 0x3f3   : > { %6131 = vmatpush3.msra.mxu0 %v8573_v41  ;;  %6125 = vmatprep.mubr.msk.f32.mxu1 %vm3420_vm7, %v8164_v56 }
 0x3f4   : > { %6142 = vmatprep.subr.mxu0 %v8574_v22  ;;  %6126 = vmatmul.mubr.msk.f32.vlgmr.msra.gmra.mxu1 %vm3420_vm7, %v8167_v25 }
 0x3f5   : > { %6133 = vmatmul.mubr.msk.f32.vlgmr.msra.gmra.mxu0 %vm3420_vm7, %v3750_v52  ;;  %6136 = vmatpush3.msra.mxu1 %v8572_v33 }
 0x3f6   : > { %6143 = vmatpush3.msra.mxu0 %v8574_v22  ;;  %6137 = vmatprep.subr.mxu1 %v8575_v10 }
 0x3f7   : > { %6139 = vmatprep.mubr.msk.f32.mxu1 %vm3420_vm7, %v3833_v59  ;;  %6144 = vmatprep.subr.mxu0 %v8576_v42 }
 0x3f8   : > { %6146 = vmatprep.mubr.msk.f32.mxu0 %vm3420_vm7, %v3918_v2  ;;  %6138 = vmatpush3.msra.mxu1 %v8575_v10 }
 0x3f9   : > { %6145 = vmatpush3.msra.mxu0 %v8576_v42  ;;  %6149 = vmatprep.subr.mxu1 %v8577_v46 }
 0x3fa   : > { %6156 = vmatprep.subr.mxu0 %v8578_v49  ;;  %6140 = vmatmul.mubr.msk.f32.vlgmr.msra.gmra.mxu1 %vm3420_vm7, %v3835_v27 }
 0x3fb   : > { %6147 = vmatmul.mubr.msk.f32.vlgmr.msra.gmra.mxu0 %vm3420_vm7, %v3920_v21  ;;  %6150 = vmatpush3.msra.mxu1 %v8577_v46 }
 0x3fc   : > { %6157 = vmatpush3.msra.mxu0 %v8578_v49  ;;  %6151 = vmatprep.subr.mxu1 %v8579_v44 }
 0x3fd   : > { %6153 = vmatprep.mubr.msk.f32.mxu1 %vm3420_vm7, %v4003_v14  ;;  %6158 = vmatprep.subr.mxu0 %v8580_v11 }
 0x3fe   : > { %6160 = vmatprep.mubr.msk.f32.mxu0 %vm3420_vm7, %v3748_v16  ;;  %6152 = vmatpush3.msra.mxu1 %v8579_v44 }
 0x3ff   : > { %6159 = vmatpush3.msra.mxu0 %v8580_v11  ;;  %6163 = vmatprep.subr.mxu1 %v8581_v18 }
 0x400   : > { %6170 = vmatprep.subr.mxu0 %v8561_v38  ;;  %6154 = vmatmul.mubr.msk.f32.vlgmr.msra.gmra.mxu1 %vm3420_vm7, %v4005_v13 }
 0x401   : > { %6161 = vmatmul.mubr.msk.f32.vlgmr.msra.gmra.mxu0 %vm3420_vm7, %v3750_v52  ;;  %6164 = vmatpush3.msra.mxu1 %v8581_v18 }
 0x402   : > { %6171 = vmatpush3.msra.mxu0 %v8561_v38  ;;  %6165 = vmatprep.subr.mxu1 %v8582_v17 }
 0x403   : > { %6167 = vmatprep.mubr.msk.f32.mxu1 %vm3420_vm7, %v3833_v59  ;;  %6172 = vmatprep.subr.mxu0 %v8562_v24 }
 0x404   : > { %6174 = vmatprep.mubr.msk.f32.mxu0 %vm3420_vm7, %v3918_v2  ;;  %6166 = vmatpush3.msra.mxu1 %v8582_v17  ;;  %v4695_v2 = vld [vmem:[%s8389_s4 + $0x10] sm:$0xff] }
 0x405   : > { %6173 = vmatpush3.msra.mxu0 %v8562_v24  ;;  %6177 = vmatprep.subr.mxu1 %v8570_v31 }
 0x406   : > { %6184 = vmatprep.subr.mxu0 %v8563_v43  ;;  %6168 = vmatmul.mubr.msk.f32.vlgmr.msra.gmra.mxu1 %vm3420_vm7, %v3835_v27  ;;  %v4694_v27 = vld [vmem:[%s8389_s4 + $0x8] sm:$0xff] }
 0x407   : > { %6175 = vmatmul.mubr.msk.f32.vlgmr.msra.gmra.mxu0 %vm3420_vm7, %v3920_v21  ;;  %6178 = vmatpush3.msra.mxu1 %v8570_v31 }
 0x408   : > { %6185 = vmatpush3.msra.mxu0 %v8563_v43  ;;  %6179 = vmatprep.subr.mxu1 %v8571_v20 }
 0x409   : > { %6181 = vmatprep.mubr.msk.f32.mxu1 %vm3420_vm7, %v4003_v14  ;;  %6186 = vmatprep.subr.mxu0 %v8573_v41 }
 0x40a   : > { %6188 = vmatprep.mubr.msk.f32.mxu0 %vm3420_vm7, %v8124_v26  ;;  %6180 = vmatpush3.msra.mxu1 %v8571_v20 }
 0x40b   : > { %6187 = vmatpush3.msra.mxu0 %v8573_v41  ;;  %6191 = vmatprep.subr.mxu1 %v8572_v33  ;;  %v4693_v41 = vld [vmem:[%s8389_s4] sm:$0xff] }
 0x40c   : > { %6198 = vmatprep.subr.mxu0 %v8574_v22  ;;  %6182 = vmatmul.mubr.msk.f32.vlgmr.msra.gmra.mxu1 %vm3420_vm7, %v4005_v13 }
 0x40d   : > { %6189 = vmatmul.mubr.msk.f32.vlgmr.msra.gmra.mxu0 %vm3420_vm7, %v8126_v53  ;;  %6192 = vmatpush3.msra.mxu1 %v8572_v33 }
 0x40e   : > { %6199 = vmatpush3.msra.mxu0 %v8574_v22  ;;  %6193 = vmatprep.subr.mxu1 %v8575_v10 }
 0x40f   : > { %6195 = vmatprep.mubr.msk.f32.mxu1 %vm3420_vm7, %v8142_v12  ;;  %6200 = vmatprep.subr.mxu0 %v8576_v42  ;;  %v4698_v12 = vld [vmem:[%s8390_s5 + $0x8] sm:$0xff] }
 0x410   : > { %6202 = vmatprep.mubr.msk.f32.mxu0 %vm3420_vm7, %v8151_v9  ;;  %6194 = vmatpush3.msra.mxu1 %v8575_v10  ;;  %v4699_v9 = vld [vmem:[%s8390_s5 + $0x10] sm:$0xff] }
 0x411   : > { %6201 = vmatpush3.msra.mxu0 %v8576_v42  ;;  %6205 = vmatprep.subr.mxu1 %v8577_v46  ;;  %v4696_v42 = vld [vmem:[%s8389_s4 + $0x18] sm:$0xff] }
 0x412   : > { %6196 = vmatmul.mubr.msk.f32.vlgmr.msra.gmra.mxu1 %vm3420_vm7, %v8144_v29  ;;  %6203 = vmatmul.mubr.msk.f32.vlgmr.msra.gmra.mxu0 %vm3420_vm7, %v8154_v30  ;;  %v4700_v30 = vld [vmem:[%s8390_s5 + $0x18] sm:$0xff] }
 0x413   : > { %6206 = vmatpush3.msra.mxu1 %v8577_v46  ;;  %6209 = vmatprep.mubr.msk.f32.mxu1 %vm3420_vm7, %v8164_v56 }
 0x414   : > { %6207 = vmatprep.subr.mxu1 %v8579_v44  ;;  %6216 = vmatprep.mubr.msk.f32.mxu0 %vm3420_vm7, %v8251_v37 }
 0x415   : > { %6208 = vmatpush3.msra.mxu1 %v8579_v44 }
 0x416   : > { %6210 = vmatmul.mubr.msk.f32.vlgmr.msra.gmra.mxu1 %vm3420_vm7, %v8167_v25 }
 0x417   : > { %6226 = vmatprep.mubr.msk.f32.mxu1 %vm3420_vm7, %v8251_v37 }
 0x48e   : > { %v6106_v35 = vpop.f32.mrf.mxu0 }
 0x490   : > { %v8257_v61 = vpop.f32.mrf.mxu0 }
 0x4ac   : > { %v8259_v23 = vpop.f32.mrf.mxu1 }
 0x4ae   : > { %v8263_v47 = vpop.f32.mrf.mxu1 }
 0x4b0   : > { %v8261_v39 = vpop.f32.mrf.mxu0 }
 0x4b2   : > { %v8265_v3 = vpop.f32.mrf.mxu0 }
 0x4b4   : > { %v8267_v28 = vpop.f32.mrf.mxu1 }
 0x4b5   : > { %v6134_v26 = vpop.f32.mrf.mxu0 }
 0x4b6   : > { %v8269_v53 = vpop.f32.mrf.mxu1  ;;  %v4086_v58 = vsub.f32 %v6106_v35, %v6134_v26 }
 0x4b7   : > { %v3821_v38 = vpop.f32.mrf.mxu0 }
 0x4b8   : > { %v4085_v55 = vsub.f32 %v8257_v61, %v3821_v38 }
 0x4ba   : > { %v6141_v24 = vpop.f32.mrf.mxu1 }
 0x4bb   : > { %v6148_v43 = vpop.f32.mrf.mxu0  ;;  %v4088_v59 = vsub.f32 %v8259_v23, %v6141_v24 }
 0x4bc   : > { %v8271_v32 = vpop.f32.mrf.mxu1  ;;  %v4090_v56 = vsub.f32 %v8261_v39, %v6148_v43 }
 0x4bd   : > { %v8273_v45 = vpop.f32.mrf.mxu0  ;;  %v4087_v25 = vsub.f32 %v8263_v47, %v8271_v32 }
 0x4be   : > { %v4089_v10 = vsub.f32 %v8265_v3, %v8273_v45 }
 0x4c0   : > { %v8275_v62 = vpop.f32.mrf.mxu1 }
 0x4c1   : > { %v6162_v15 = vpop.f32.mrf.mxu0  ;;  %v4092_v22 = vsub.f32 %v8267_v28, %v8275_v62 }
 0x4c2   : > { %v8277_v50 = vpop.f32.mrf.mxu1 }
 0x4c3   : > { %v4159_v4 = vpop.f32.mrf.mxu0  ;;  %v4091_v21 = vsub.f32 %v8269_v53, %v8277_v50 }
 0x4c6   : > { %v6169_v36 = vpop.f32.mrf.mxu1 }
 0x4c7   : > { %v6176_v63 = vpop.f32.mrf.mxu0 }
 0x4c8   : > { %v4234_v60 = vpop.f32.mrf.mxu1 }
 0x4c9   : > { %v4309_v57 = vpop.f32.mrf.mxu0 }
 0x4cc   : > { %v6183_v40 = vpop.f32.mrf.mxu1 }
 0x4cd   : > { %v6190_v5 = vpop.f32.mrf.mxu0 }
 0x4ce   : > { %v4465_v51 = vadd.f32 %v6190_v5, %v6162_v15  ;;  %v4384_v1 = vpop.f32.mrf.mxu1 }
 0x4cf   : > { %v4459_v0 = vpop.f32.mrf.mxu0 }
 0x4d0   : > { %v4460_v7 = vadd.f32 %v4459_v0, %v4159_v4  ;;  %6212 = vmatprep.subr.mxu0 %v4465_v51 }
 0x4d1   : > { %6213 = vmatpush3.msra.mxu0 %v4465_v51 }
 0x4d2   : > { %v6197_v8 = vpop.f32.mrf.mxu1  ;;  %v6204_v29 = vpop.f32.mrf.mxu0  ;;  %6214 = vmatprep.subr.mxu0 %v4460_v7 }
 0x4d3   : > { %v4540_v16 = vadd.f32 %v6197_v8, %v6169_v36  ;;  %v4615_v19 = vadd.f32 %v6204_v29, %v6176_v63  ;;  %6215 = vmatpush3.msra.mxu0 %v4460_v7 }
 0x4d4   : > { %v4534_v6 = vpop.f32.mrf.mxu1  ;;  %v4609_v48 = vpop.f32.mrf.mxu0  ;;  %6217 = vmatmul.mubr.msk.f32.vlgmr.msra.gmra.mxu0 %vm3420_vm7, %v4698_v12 }
 0x4d5   : > { %v4535_v52 = vadd.f32 %v4534_v6, %v4234_v60  ;;  %v4610_v31 = vadd.f32 %v4609_v48, %v4309_v57  ;;  %6222 = vmatprep.subr.mxu1 %v4540_v16  ;;  %6232 = vmatprep.subr.mxu0 %v4615_v19 }
 0x4d6   : > { %v6211_v54 = vpop.f32.mrf.mxu1  ;;  %6223 = vmatpush3.msra.mxu1 %v4540_v16  ;;  %6233 = vmatpush3.msra.mxu0 %v4615_v19 }
 0x4d7   : > { %v4690_v20 = vadd.f32 %v6211_v54, %v6183_v40  ;;  %6224 = vmatprep.subr.mxu1 %v4535_v52  ;;  %6234 = vmatprep.subr.mxu0 %v4610_v31 }
 0x4d8   : > { %v4684_v34 = vpop.f32.mrf.mxu1  ;;  %6219 = vmatprep.mubr.msk.f32.mxu0 %vm3420_vm7, %v4699_v9  ;;  %6225 = vmatpush3.msra.mxu1 %v4535_v52 }
 0x4d9   : > { %v4685_v33 = vadd.f32 %v4684_v34, %v4384_v1  ;;  %6235 = vmatpush3.msra.mxu0 %v4610_v31  ;;  %6227 = vmatmul.mubr.msk.f32.vlgmr.msra.gmra.mxu1 %vm3420_vm7, %v4698_v12 }
 0x4da   : > { %6220 = vmatmul.mubr.msk.f32.gmra.mxu0 %vm3420_vm7, %v4700_v30  ;;  %6242 = vmatprep.subr.mxu1 %v4690_v20 }
 0x4db   : > { %6252 = vmatprep.subr.mxu0 %v4086_v58  ;;  %6243 = vmatpush3.msra.mxu1 %v4690_v20 }
 0x4dc   : > { %6244 = vmatprep.subr.mxu1 %v4685_v33  ;;  %6229 = vmatprep.mubr.msk.f32.mxu1 %vm3420_vm7, %v4699_v9 }
 0x4dd   : > { %6236 = vmatprep.mubr.msk.f32.mxu0 %vm3420_vm7, %v8251_v37  ;;  %6245 = vmatpush3.msra.mxu1 %v4685_v33 }
 0x4de   : > { %6230 = vmatmul.mubr.msk.f32.gmra.mxu1 %vm3420_vm7, %v4700_v30  ;;  %6237 = vmatmul.mubr.msk.f32.vlgmr.msra.gmra.mxu0 %vm3420_vm7, %v4698_v12 }
 0x4df   : > { %6253 = vmatpush3.msra.mxu0 %v4086_v58  ;;  %6262 = vmatprep.subr.mxu1 %v4088_v59 }
 0x4e0   : > { %6254 = vmatprep.subr.mxu0 %v4085_v55  ;;  %6239 = vmatprep.mubr.msk.f32.mxu0 %vm3420_vm7, %v4699_v9 }
 0x4e1   : > { %6255 = vmatpush3.msra.mxu0 %v4085_v55  ;;  %6246 = vmatprep.mubr.msk.f32.mxu1 %vm3420_vm7, %v8251_v37 }
 0x4e2   : > { %6272 = vmatprep.subr.mxu0 %v4090_v56  ;;  %6240 = vmatmul.mubr.msk.f32.gmra.mxu0 %vm3420_vm7, %v4700_v30 }
 0x4e3   : > { %6247 = vmatmul.mubr.msk.f32.vlgmr.msra.gmra.mxu1 %vm3420_vm7, %v4698_v12  ;;  %6256 = vmatprep.mubr.msk.f32.mxu0 %vm3420_vm7, %v4693_v41 }
 0x4e4   : > { %6263 = vmatpush3.msra.mxu1 %v4088_v59  ;;  %6249 = vmatprep.mubr.msk.f32.mxu1 %vm3420_vm7, %v4699_v9 }
 0x4e5   : > { %6264 = vmatprep.subr.mxu1 %v4087_v25 }
 0x4e6   : > { %6265 = vmatpush3.msra.mxu1 %v4087_v25  ;;  %6257 = vmatmul.mubr.msk.f32.vlgmr.msra.gmra.mxu0 %vm3420_vm7, %v4694_v27 }
 0x4e7   : > { %6282 = vmatprep.subr.mxu1 %v4092_v22  ;;  %6250 = vmatmul.mubr.msk.f32.gmra.mxu1 %vm3420_vm7, %v4700_v30 }
 0x4e8   : > { %6273 = vmatpush3.msra.mxu0 %v4090_v56  ;;  %6259 = vmatprep.mubr.msk.f32.mxu0 %vm3420_vm7, %v4695_v2 }
 0x4e9   : > { %6274 = vmatprep.subr.mxu0 %v4089_v10  ;;  %6266 = vmatprep.mubr.msk.f32.mxu1 %vm3420_vm7, %v4693_v41 }
 0x4ea   : > { %6275 = vmatpush3.msra.mxu0 %v4089_v10 }
 0x4eb   : > { %6260 = vmatmul.mubr.msk.f32.gmra.mxu0 %vm3420_vm7, %v4696_v42  ;;  %6267 = vmatmul.mubr.msk.f32.vlgmr.msra.gmra.mxu1 %vm3420_vm7, %v4694_v27 }
 0x4ec   : > { %6283 = vmatpush3.msra.mxu1 %v4092_v22  ;;  %6269 = vmatprep.mubr.msk.f32.mxu1 %vm3420_vm7, %v4695_v2 }
 0x4ed   : > { %6284 = vmatprep.subr.mxu1 %v4091_v21  ;;  %6276 = vmatprep.mubr.msk.f32.mxu0 %vm3420_vm7, %v4693_v41 }
 0x4ee   : > { %6285 = vmatpush3.msra.mxu1 %v4091_v21 }
 0x4ef   : > { %6270 = vmatmul.mubr.msk.f32.gmra.mxu1 %vm3420_vm7, %v4696_v42  ;;  %6277 = vmatmul.mubr.msk.f32.vlgmr.msra.gmra.mxu0 %vm3420_vm7, %v4694_v27 }
 0x4f0   : > { %6279 = vmatprep.mubr.msk.f32.mxu0 %vm3420_vm7, %v4695_v2  ;;  %6286 = vmatprep.mubr.msk.f32.mxu1 %vm3420_vm7, %v4693_v41 }
 0x4f3   : > { %6280 = vmatmul.mubr.msk.f32.gmra.mxu0 %vm3420_vm7, %v4696_v42  ;;  %6287 = vmatmul.mubr.msk.f32.vlgmr.msra.gmra.mxu1 %vm3420_vm7, %v4694_v27 }
 0x4f4   : > { %6289 = vmatprep.mubr.msk.f32.mxu1 %vm3420_vm7, %v4695_v2 }
 0x4f7   : > { %6290 = vmatmul.mubr.msk.f32.gmra.mxu1 %vm3420_vm7, %v4696_v42 }
 0x594   : > { %v6218_v46 = vpop.f32.mrf.mxu0 }
 0x596   : > { %v4779_v49 = vpop.f32.mrf.mxu0 }
 0x599   : > { %v6228_v14 = vpop.f32.mrf.mxu1 }
 0x59a   : > { %v6221_v44 = vpop.f32.mrf.mxu0 }
 0x59b   : > { %v4864_v11 = vpop.f32.mrf.mxu1 }
 0x59c   : > { %v4789_v13 = vpop.f32.mrf.mxu0 }
 0x59e   : > { %v6231_v18 = vpop.f32.mrf.mxu1  ;;  %v6238_v17 = vpop.f32.mrf.mxu0 }
 0x5a0   : > { %v4874_v37 = vpop.f32.mrf.mxu1  ;;  %v4949_v35 = vpop.f32.mrf.mxu0 }
 0x5a2   : > { %v6241_v61 = vpop.f32.mrf.mxu0 }
 0x5a3   : > { %v6248_v23 = vpop.f32.mrf.mxu1 }
 0x5a4   : > { %v4959_v39 = vpop.f32.mrf.mxu0 }
 0x5a5   : > { %v5034_v47 = vpop.f32.mrf.mxu1 }
 0x5a6   : > { %v6258_v3 = vpop.f32.mrf.mxu0 }
 0x5a7   : > { %v6251_v28 = vpop.f32.mrf.mxu1  ;;  %v5137_v26 = vadd.f32 %v6258_v3, %v6218_v46 }
 0x5a8   : > { %v5131_v53 = vpop.f32.mrf.mxu0 }
 0x5a9   : > { %5406 = vst.msk [vmem:[%s8348_s25 + $0x8] sm:$0xff] %vm1039_vm2, %v5137_v26  ;;  %v5044_v38 = vpop.f32.mrf.mxu1  ;;  %v5132_v24 = vadd.f32 %v5131_v53, %v4779_v49 }
 0x5ab   : > { %5405 = vst.msk [vmem:[%s8348_s25] sm:$0xff] %vm1039_vm2, %v5132_v24  ;;  %v6261_v43 = vpop.f32.mrf.mxu0  ;;  %v6268_v32 = vpop.f32.mrf.mxu1 }
 0x5ac   : > { %v5147_v45 = vadd.f32 %v6261_v43, %v6221_v44  ;;  %v5222_v62 = vadd.f32 %v6268_v32, %v6228_v14 }
 0x5ad   : > { %v5141_v15 = vpop.f32.mrf.mxu0  ;;  %v5216_v50 = vpop.f32.mrf.mxu1 }
 0x5ae   : > { %5408 = vst.msk [vmem:[%s8348_s25 + $0x18] sm:$0xff] %vm1039_vm2, %v5147_v45  ;;  %5410 = vst.msk [vmem:[%s8348_s25 + $0x28] sm:$0xff] %vm1039_vm2, %v5222_v62  ;;  %v5142_v4 = vadd.f32 %v5141_v15, %v4789_v13  ;;  %v5217_v36 = vadd.f32 %v5216_v50, %v4864_v11 }
 0x5af   : > { %v6271_v63 = vpop.f32.mrf.mxu1  ;;  %v6278_v60 = vpop.f32.mrf.mxu0 }
 0x5b0   : > { %5407 = vst.msk [vmem:[%s8348_s25 + $0x10] sm:$0xff] %vm1039_vm2, %v5142_v4  ;;  %5409 = vst.msk [vmem:[%s8348_s25 + $0x20] sm:$0xff] %vm1039_vm2, %v5217_v36  ;;  %v5232_v57 = vadd.f32 %v6271_v63, %v6231_v18  ;;  %v5307_v40 = vadd.f32 %v6278_v60, %v6238_v17 }
 0x5b1   : > { %v5226_v5 = vpop.f32.mrf.mxu1  ;;  %v5301_v51 = vpop.f32.mrf.mxu0 }
 0x5b2   : > { %5412 = vst.msk [vmem:[%s8348_s25 + $0x38] sm:$0xff] %vm1039_vm2, %v5232_v57  ;;  %5414 = vst.msk [vmem:[%s8348_s25 + $0x48] sm:$0xff] %vm1039_vm2, %v5307_v40  ;;  %v5227_v1 = vadd.f32 %v5226_v5, %v4874_v37  ;;  %v5302_v0 = vadd.f32 %v5301_v51, %v4949_v35 }
 0x5b3   : > { %v6281_v7 = vpop.f32.mrf.mxu0  ;;  %v6288_v12 = vpop.f32.mrf.mxu1 }
 0x5b4   : > { %5411 = vst.msk [vmem:[%s8348_s25 + $0x30] sm:$0xff] %vm1039_vm2, %v5227_v1  ;;  %5413 = vst.msk [vmem:[%s8348_s25 + $0x40] sm:$0xff] %vm1039_vm2, %v5302_v0  ;;  %v5317_v8 = vadd.f32 %v6281_v7, %v6241_v61  ;;  %v5392_v29 = vadd.f32 %v6288_v12, %v6248_v23 }
 0x5b5   : > { %v5311_v16 = vpop.f32.mrf.mxu0  ;;  %v5386_v19 = vpop.f32.mrf.mxu1 }
 0x5b6   : > { %5416 = vst.msk [vmem:[%s8348_s25 + $0x58] sm:$0xff] %vm1039_vm2, %v5317_v8  ;;  %5418 = vst.msk [vmem:[%s8348_s25 + $0x68] sm:$0xff] %vm1039_vm2, %v5392_v29  ;;  %v5312_v6 = vadd.f32 %v5311_v16, %v4959_v39  ;;  %v5387_v48 = vadd.f32 %v5386_v19, %v5034_v47 }
 0x5b7   : > { %v6291_v52 = vpop.f32.mrf.mxu1 }
 0x5b8   : > { %5415 = vst.msk [vmem:[%s8348_s25 + $0x50] sm:$0xff] %vm1039_vm2, %v5312_v6  ;;  %5417 = vst.msk [vmem:[%s8348_s25 + $0x60] sm:$0xff] %vm1039_vm2, %v5387_v48  ;;  %v5402_v31 = vadd.f32 %v6291_v52, %v6251_v28 }
 0x5b9   : > { %v5396_v9 = vpop.f32.mrf.mxu1 }
 0x5ba   : > { %5420 = vst.msk [vmem:[%s8348_s25 + $0x78] sm:$0xff] %vm1039_vm2, %v5402_v31  ;;  %v5397_v54 = vadd.f32 %v5396_v9, %v5044_v38 }
 0x5bc   : > { %5419 = vst.msk [vmem:[%s8348_s25 + $0x70] sm:$0xff] %vm1039_vm2, %v5397_v54 }
 0x5bd PF: > { %s16_s21 = sadd.s32 1, %s6459_s21  }
 0x5be   : > { %p13_p4 = scmp.ge.s32.totalorder %s16_s21, 4  }
 0x5c0   :  { %15 = sbr.rel (!%p13_p4) target bundleno = 1 (0x1), region = 77 }

</bundles_post_ra>
